<compile_context>
chip_gen: v5e
topology: v5e:2x2
jax: 0.10.0
libtpu: 0.0.40
codegen_flags: <defaults>
</compile_context>

<pallas_src>
import jax
import jax.numpy as jnp
from jax.experimental import pallas as pl
from jax.experimental.pallas import tpu as pltpu


# ------------------------- model dimensions (small, consistent) -------------------------
B = 2                          # batch
C, H, W = 3, 16, 16
IMG_IN = C * H * W             # 768
IMG_EMBED = 64                 # stand-in vision-tower embed_dim
CLIN_IN = 8                    # drug-embedding dim
CLIN_IN_PAD = 16               # padded so the folded block is bf16-tile aligned
CLIN_OUT = 128                 # ClinicalEncoder output (hard-coded in module)
VOCAB = 100
SEQ = 8
TXT_EMBED = 256                # TextEncoder embed_dim (hard-coded)
TXT_OUT = 128                  # TextEncoder output (hard-coded)
TOTAL = 3 * IMG_EMBED + CLIN_OUT + TXT_OUT    # 448
H1, H2, H3 = 512, 256, 128
NUM_CLASSES = 2
NUM_CLASSES_PAD = 128          # lane-padded classifier width (unmasked stores)

# w1_packed row layout (clinical encoder folded; original clinical rows removed)
W1P_TXT = 3 * IMG_EMBED                 # 192  (rows 0:192   = image feature rows)
W1P_CLIN = W1P_TXT + TXT_OUT            # 320  (rows 192:320 = text feature rows)
W1P_ROWS = W1P_CLIN + CLIN_IN_PAD       # 336  (rows 320:336 = folded clinical rows)

# w_small slab row layout (all 128-lane-wide weights, row-stacked)
WS_TXT = 0                              # rows 0:256   = w_txt   (256, 128)
WS_W3 = TXT_EMBED                       # rows 256:512 = w3      (256, 128)
WS_WC = WS_W3 + H2                      # rows 512:640 = wc_pad  (128, 128)
WS_ROWS = WS_WC + H3                    # 640


# --------------------------------- Pallas kernel ---------------------------------------
def combined_classifier_kernel(
    img_ref,       # (3*bp, IMG_IN)       bf16   flair|t1|t2 stacked on rows (stream-major)
    clin_ref,      # (bp, CLIN_IN_PAD)    bf16
    txt_ref,       # (bp, TXT_EMBED)      bf16   (mean-pooled in glue)
    w_img_ref,     # (IMG_IN, IMG_EMBED)  bf16
    w1_ref,        # (W1P_ROWS, H1)       bf16   packed / clinical-folded fc1 weight
    w2_ref,        # (H1, H2)             bf16
    wsmall_ref,    # (WS_ROWS, 128)       bf16   [w_txt | w3 | wc_pad] row-stacked
    bias_ref,      # (8, H1)              f32    packed biases (one per row, lane-padded)
    logits_ref,    # (bp, NUM_CLASSES_PAD) f32
):
    f32 = jnp.float32
    bf16 = jnp.bfloat16
    bp = clin_ref.shape[0]
    e = IMG_EMBED

    # --- unpack the bias slab (one DMA'd operand, static value slices) ---
    bias = bias_ref[...]                       # (8, 512) f32
    b_img = bias[0:1, 0:IMG_EMBED]
    b_txt = bias[1:2, 0:TXT_OUT]
    b1 = bias[2:3, 0:H1]                       # already includes the folded b_clin term
    b2 = bias[3:4, 0:H2]
    b3 = bias[4:5, 0:H3]
    bc = bias[5:6, 0:NUM_CLASSES_PAD]

    # --- shared image "encoder" for all three streams: one MXU pass over w_img ---
    f_img = jnp.dot(img_ref[...], w_img_ref[...], preferred_element_type=f32) + b_img
    # bp is a multiple of 8, so these f32 row slices are sublane/vreg aligned.
    f_fl = f_img[0 * bp:1 * bp].astype(bf16)
    f_t1 = f_img[1 * bp:2 * bp].astype(bf16)
    f_t2 = f_img[2 * bp:3 * bp].astype(bf16)

    # --- TextEncoder projection (mean-pool already done in glue): Linear(256 -> 128) ---
    f_txt = (jnp.dot(txt_ref[...], wsmall_ref[WS_TXT:WS_W3, :], preferred_element_type=f32)
             + b_txt).astype(bf16)

    # --- fc1 without the lane-misaligned concat ---
    # cat([f_flair, f_t1, f_t2, clinical_enc(clin), f_txt], 1) @ w1
    #   == sum of partial dots against static, tile-aligned row blocks of w1_packed,
    #      with the ClinicalEncoder Linear folded into its row block (exact, no activation).
    h = (jnp.dot(f_fl, w1_ref[0:e, :], preferred_element_type=f32)
         + jnp.dot(f_t1, w1_ref[e:2 * e, :], preferred_element_type=f32)
         + jnp.dot(f_t2, w1_ref[2 * e:3 * e, :], preferred_element_type=f32)
         + jnp.dot(f_txt, w1_ref[W1P_TXT:W1P_CLIN, :], preferred_element_type=f32)
         + jnp.dot(clin_ref[...], w1_ref[W1P_CLIN:W1P_ROWS, :], preferred_element_type=f32)
         + b1)
    h = jnp.maximum(h, 0.0).astype(bf16)

    # hidden_fc layers 2 & 3 (dropout = identity at inference)
    h = jnp.maximum(jnp.dot(h, w2_ref[...], preferred_element_type=f32) + b2,
                    0.0).astype(bf16)
    h = jnp.maximum(jnp.dot(h, wsmall_ref[WS_W3:WS_WC, :], preferred_element_type=f32) + b3,
                    0.0).astype(bf16)

    # classifier (lane-padded output; real logits live in lanes [0:NUM_CLASSES])
    logits_ref[...] = (jnp.dot(h, wsmall_ref[WS_WC:WS_ROWS, :], preferred_element_type=f32)
                       + bc)


# --------------------------------- wrapper ----------------------------------------------
def _pad_rows(x, rows):
    return jnp.pad(x, ((0, rows - x.shape[0]),) + ((0, 0),) * (x.ndim - 1))


@jax.jit
def combined_classifier(flair, t1, t2, clinical, text_tokens, params):
    b = flair.shape[0]
    bp = max(8, ((b + 7) // 8) * 8)          # row-pad so per-stream splits stay vreg-aligned
    bf16 = jnp.bfloat16

    # Stack the three image streams along rows (stream-major), padded to bp rows each.
    img_stacked = jnp.concatenate(
        [_pad_rows(flair.reshape(b, -1), bp),
         _pad_rows(t1.reshape(b, -1), bp),
         _pad_rows(t2.reshape(b, -1), bp)], axis=0).astype(bf16)         # (3*bp, IMG_IN)

    # Embedding gather + mean-pool in glue (data-dependent gather; tiny pooled tensor).
    txt_emb = jnp.take(params["embedding"], text_tokens, axis=0)         # (b, SEQ, TXT_EMBED)
    pooled = _pad_rows(jnp.mean(txt_emb.astype(jnp.float32), axis=1), bp).astype(bf16)

    clin = _pad_rows(
        jnp.pad(clinical, ((0, 0), (0, CLIN_IN_PAD - CLIN_IN))), bp).astype(bf16)

    inputs = [img_stacked, clin, pooled,
              params["w_img"], params["w1_packed"], params["w2"],
              params["w_small"], params["bias_slab"]]

    vmem = pl.BlockSpec(memory_space=pltpu.MemorySpace.VMEM)
    logits_pad = pl.pallas_call(
        combined_classifier_kernel,
        in_specs=[vmem] * len(inputs),
        out_specs=vmem,
        out_shape=jax.ShapeDtypeStruct((bp, NUM_CLASSES_PAD), jnp.float32),
    )(*inputs)

    logits = logits_pad[:b, :NUM_CLASSES]
    probs = jax.nn.sigmoid(logits)
    return logits, probs


# --------------------------------- param init / packing ---------------------------------
def init_raw_params(key):
    """Module-style (PyTorch-layout) parameters in f32."""
    ks = jax.random.split(key, 15)
    s = 0.02
    f32 = jnp.float32
    n = lambda i, shape: s * jax.random.normal(ks[i], shape, f32)
    return {
        "w_img": n(0, (IMG_IN, IMG_EMBED)), "b_img": n(1, (IMG_EMBED,)),
        "w_clin": n(2, (CLIN_IN, CLIN_OUT)), "b_clin": n(3, (CLIN_OUT,)),
        "embedding": n(4, (VOCAB, TXT_EMBED)),
        "w_txt": n(5, (TXT_EMBED, TXT_OUT)), "b_txt": n(6, (TXT_OUT,)),
        "w1": n(7, (TOTAL, H1)), "b1": n(8, (H1,)),
        "w2": n(9, (H1, H2)), "b2": n(10, (H2,)),
        "w3": n(11, (H2, H3)), "b3": n(12, (H3,)),
        "wc": n(13, (H3, NUM_CLASSES)), "bc": n(14, (NUM_CLASSES,)),
    }


def pack_params(raw):
    """Offline packing: fold ClinicalEncoder into fc1, coalesce small operands."""
    bf16 = jnp.bfloat16
    f32 = jnp.float32

    o_clin = 3 * IMG_EMBED                  # 192
    o_txt = o_clin + CLIN_OUT               # 320
    w1 = raw["w1"]
    w1_img = w1[:o_clin]                    # (192, H1)
    w1_clin = w1[o_clin:o_txt]              # (128, H1)
    w1_txt = w1[o_txt:o_txt + TXT_OUT]      # (128, H1)

    # Fold the ClinicalEncoder Linear (no activation before fc1 in the module) into fc1.
    w_clin_fold = jnp.pad(raw["w_clin"] @ w1_clin, ((0, CLIN_IN_PAD - CLIN_IN), (0, 0)))
    b1_fold = raw["b1"] + raw["b_clin"] @ w1_clin

    w1_packed = jnp.concatenate([w1_img, w1_txt, w_clin_fold], axis=0).astype(bf16)  # (336, H1)

    wc_pad = jnp.pad(raw["wc"], ((0, 0), (0, NUM_CLASSES_PAD - NUM_CLASSES)))        # (128, 128)
    w_small = jnp.concatenate([raw["w_txt"], raw["w3"], wc_pad], axis=0).astype(bf16)  # (640, 128)

    def row(v):
        return jnp.pad(v, (0, H1 - v.shape[0]))[None, :]
    bias_slab = jnp.concatenate(
        [row(raw["b_img"]), row(raw["b_txt"]), row(b1_fold), row(raw["b2"]),
         row(raw["b3"]), row(jnp.pad(raw["bc"], (0, NUM_CLASSES_PAD - NUM_CLASSES))),
         jnp.zeros((2, H1), f32)], axis=0).astype(f32)                                # (8, 512)

    return {
        "embedding": raw["embedding"],
        "w_img": raw["w_img"].astype(bf16),
        "w1_packed": w1_packed,
        "w2": raw["w2"].astype(bf16),
        "w_small": w_small,
        "bias_slab": bias_slab,
    }


# --------------------------------- pure-JAX reference ------------------------------------
def reference_forward(flair, t1, t2, clinical, text_tokens, raw):
    """Concat-form reference mirroring the original module structure (bf16-cast weights)."""
    f32 = jnp.float32
    b = flair.shape[0]
    cast = lambda a: a.astype(jnp.bfloat16).astype(f32)
    dense = lambda x, w, bias: x @ cast(raw[w]) + raw[bias].astype(f32)

    f_fl = dense(cast(flair.reshape(b, -1)), "w_img", "b_img")
    f_t1 = dense(cast(t1.reshape(b, -1)), "w_img", "b_img")
    f_t2 = dense(cast(t2.reshape(b, -1)), "w_img", "b_img")
    f_cl = dense(cast(clinical), "w_clin", "b_clin")
    emb = jnp.take(raw["embedding"], text_tokens, axis=0)
    f_tx = dense(cast(jnp.mean(emb, axis=1)), "w_txt", "b_txt")

    comb = jnp.concatenate([f_fl, f_t1, f_t2, f_cl, f_tx], axis=1)
    h = jnp.maximum(dense(comb, "w1", "b1"), 0.0)
    h = jnp.maximum(dense(h, "w2", "b2"), 0.0)
    h = jnp.maximum(dense(h, "w3", "b3"), 0.0)
    logits = dense(h, "wc", "bc")
    return logits, jax.nn.sigmoid(logits)


# --------------------------------- main -------------------------------------------------
if __name__ == "__main__":
    key = jax.random.PRNGKey(0)
    k_params, k_fl, k_t1, k_t2, k_cl, k_tok = jax.random.split(key, 6)

    raw = init_raw_params(k_params)
    params = pack_params(raw)

    flair = jax.random.normal(k_fl, (B, C, H, W), jnp.float32)
    t1 = jax.random.normal(k_t1, (B, C, H, W), jnp.float32)
    t2 = jax.random.normal(k_t2, (B, C, H, W), jnp.float32)
    clinical = jax.random.normal(k_cl, (B, CLIN_IN), jnp.float32)
    text_tokens = jax.random.randint(k_tok, (B, SEQ), 0, VOCAB, jnp.int32)

    logits, probs = combined_classifier(flair, t1, t2, clinical, text_tokens, params)
    jax.block_until_ready((logits, probs))

    assert logits.shape == (B, NUM_CLASSES) and probs.shape == (B, NUM_CLASSES)
    assert bool(jnp.all(jnp.isfinite(logits)))
    assert bool(jnp.all((probs >= 0) & (probs <= 1)))

    # Loose tolerance vs. the concat-form f32 reference (bf16 weights/activations in-kernel,
    # clinical fold applied algebraically).
    ref_logits, ref_probs = reference_forward(flair, t1, t2, clinical, text_tokens, raw)
    max_diff = float(jnp.max(jnp.abs(logits - ref_logits)))
    assert max_diff < 5e-2, f"logits mismatch vs reference: {max_diff}"

    print("KERNEL_OK")
</pallas_src>

<mosaic_0001>
module attributes {stable_mosaic.version = 11 : i64} {
  func.func @combined_classifier_kernel(%arg0: memref<24x768xbf16, #tpu.memory_space<vmem>>, %arg1: memref<8x16xbf16, #tpu.memory_space<vmem>>, %arg2: memref<8x256xbf16, #tpu.memory_space<vmem>>, %arg3: memref<768x64xbf16, #tpu.memory_space<vmem>>, %arg4: memref<336x512xbf16, #tpu.memory_space<vmem>>, %arg5: memref<512x256xbf16, #tpu.memory_space<vmem>>, %arg6: memref<640x128xbf16, #tpu.memory_space<vmem>>, %arg7: memref<8x512xf32, #tpu.memory_space<vmem>>, %arg8: memref<8x128xf32, #tpu.memory_space<vmem>>) attributes {dimension_semantics = [], scalar_prefetch = 0 : i64, scratch_operands = 0 : i64, tpu.core_type = #tpu.core_type<tc>} {
    %c0 = arith.constant 0 : index
    %c0_0 = arith.constant 0 : index
    %0 = vector.load %arg7[%c0, %c0_0] : memref<8x512xf32, #tpu.memory_space<vmem>>, vector<8x512xf32>
    %1 = vector.extract_strided_slice %0 {offsets = [0, 0], sizes = [1, 64], strides = [1, 1]} : vector<8x512xf32> to vector<1x64xf32>
    %2 = vector.extract_strided_slice %0 {offsets = [1, 0], sizes = [1, 128], strides = [1, 1]} : vector<8x512xf32> to vector<1x128xf32>
    %3 = vector.extract_strided_slice %0 {offsets = [2, 0], sizes = [1, 512], strides = [1, 1]} : vector<8x512xf32> to vector<1x512xf32>
    %4 = vector.extract_strided_slice %0 {offsets = [3, 0], sizes = [1, 256], strides = [1, 1]} : vector<8x512xf32> to vector<1x256xf32>
    %5 = vector.extract_strided_slice %0 {offsets = [4, 0], sizes = [1, 128], strides = [1, 1]} : vector<8x512xf32> to vector<1x128xf32>
    %6 = vector.extract_strided_slice %0 {offsets = [5, 0], sizes = [1, 128], strides = [1, 1]} : vector<8x512xf32> to vector<1x128xf32>
    %c0_1 = arith.constant 0 : index
    %c0_2 = arith.constant 0 : index
    %7 = vector.load %arg0[%c0_1, %c0_2] : memref<24x768xbf16, #tpu.memory_space<vmem>>, vector<24x768xbf16>
    %c0_3 = arith.constant 0 : index
    %c0_4 = arith.constant 0 : index
    %8 = vector.load %arg3[%c0_3, %c0_4] : memref<768x64xbf16, #tpu.memory_space<vmem>>, vector<768x64xbf16>
    %cst = arith.constant dense<0.000000e+00> : vector<24x64xf32>
    %9 = tpu.matmul %7, %8, %cst {dimension_numbers = #tpu.dot_dimension_numbers<[1], [0], [0], [1], [0, 0, 1, 1], [], []>} : vector<24x768xbf16>, vector<768x64xbf16>, vector<24x64xf32> -> vector<24x64xf32>
    %10 = vector.broadcast %1 : vector<1x64xf32> to vector<24x64xf32>
    %11 = arith.addf %9, %10 : vector<24x64xf32>
    %12 = vector.extract_strided_slice %11 {offsets = [0, 0], sizes = [8, 64], strides = [1, 1]} : vector<24x64xf32> to vector<8x64xf32>
    %13 = arith.truncf %12 : vector<8x64xf32> to vector<8x64xbf16>
    %14 = vector.extract_strided_slice %11 {offsets = [8, 0], sizes = [8, 64], strides = [1, 1]} : vector<24x64xf32> to vector<8x64xf32>
    %15 = arith.truncf %14 : vector<8x64xf32> to vector<8x64xbf16>
    %16 = vector.extract_strided_slice %11 {offsets = [16, 0], sizes = [8, 64], strides = [1, 1]} : vector<24x64xf32> to vector<8x64xf32>
    %17 = arith.truncf %16 : vector<8x64xf32> to vector<8x64xbf16>
    %c0_5 = arith.constant 0 : index
    %c0_6 = arith.constant 0 : index
    %18 = vector.load %arg2[%c0_5, %c0_6] : memref<8x256xbf16, #tpu.memory_space<vmem>>, vector<8x256xbf16>
    %c0_7 = arith.constant 0 : index
    %c0_8 = arith.constant 0 : index
    %19 = vector.load %arg6[%c0_7, %c0_8] : memref<640x128xbf16, #tpu.memory_space<vmem>>, vector<256x128xbf16>
    %cst_9 = arith.constant dense<0.000000e+00> : vector<8x128xf32>
    %20 = tpu.matmul %18, %19, %cst_9 {dimension_numbers = #tpu.dot_dimension_numbers<[1], [0], [0], [1], [0, 0, 1, 1], [], []>} : vector<8x256xbf16>, vector<256x128xbf16>, vector<8x128xf32> -> vector<8x128xf32>
    %21 = vector.broadcast %2 : vector<1x128xf32> to vector<8x128xf32>
    %22 = arith.addf %20, %21 : vector<8x128xf32>
    %23 = arith.truncf %22 : vector<8x128xf32> to vector<8x128xbf16>
    %c0_10 = arith.constant 0 : index
    %c0_11 = arith.constant 0 : index
    %24 = vector.load %arg4[%c0_10, %c0_11] : memref<336x512xbf16, #tpu.memory_space<vmem>>, vector<64x512xbf16>
    %cst_12 = arith.constant dense<0.000000e+00> : vector<8x512xf32>
    %25 = tpu.matmul %13, %24, %cst_12 {dimension_numbers = #tpu.dot_dimension_numbers<[1], [0], [0], [1], [0, 0, 1, 1], [], []>} : vector<8x64xbf16>, vector<64x512xbf16>, vector<8x512xf32> -> vector<8x512xf32>
    %c64 = arith.constant 64 : index
    %c0_13 = arith.constant 0 : index
    %26 = vector.load %arg4[%c64, %c0_13] : memref<336x512xbf16, #tpu.memory_space<vmem>>, vector<64x512xbf16>
    %cst_14 = arith.constant dense<0.000000e+00> : vector<8x512xf32>
    %27 = tpu.matmul %15, %26, %cst_14 {dimension_numbers = #tpu.dot_dimension_numbers<[1], [0], [0], [1], [0, 0, 1, 1], [], []>} : vector<8x64xbf16>, vector<64x512xbf16>, vector<8x512xf32> -> vector<8x512xf32>
    %28 = arith.addf %25, %27 : vector<8x512xf32>
    %c128 = arith.constant 128 : index
    %c0_15 = arith.constant 0 : index
    %29 = vector.load %arg4[%c128, %c0_15] : memref<336x512xbf16, #tpu.memory_space<vmem>>, vector<64x512xbf16>
    %cst_16 = arith.constant dense<0.000000e+00> : vector<8x512xf32>
    %30 = tpu.matmul %17, %29, %cst_16 {dimension_numbers = #tpu.dot_dimension_numbers<[1], [0], [0], [1], [0, 0, 1, 1], [], []>} : vector<8x64xbf16>, vector<64x512xbf16>, vector<8x512xf32> -> vector<8x512xf32>
    %31 = arith.addf %28, %30 : vector<8x512xf32>
    %c192 = arith.constant 192 : index
    %c0_17 = arith.constant 0 : index
    %32 = vector.load %arg4[%c192, %c0_17] : memref<336x512xbf16, #tpu.memory_space<vmem>>, vector<128x512xbf16>
    %cst_18 = arith.constant dense<0.000000e+00> : vector<8x512xf32>
    %33 = tpu.matmul %23, %32, %cst_18 {dimension_numbers = #tpu.dot_dimension_numbers<[1], [0], [0], [1], [0, 0, 1, 1], [], []>} : vector<8x128xbf16>, vector<128x512xbf16>, vector<8x512xf32> -> vector<8x512xf32>
    %34 = arith.addf %31, %33 : vector<8x512xf32>
    %c0_19 = arith.constant 0 : index
    %c0_20 = arith.constant 0 : index
    %35 = vector.load %arg1[%c0_19, %c0_20] : memref<8x16xbf16, #tpu.memory_space<vmem>>, vector<8x16xbf16>
    %c320 = arith.constant 320 : index
    %c0_21 = arith.constant 0 : index
    %36 = vector.load %arg4[%c320, %c0_21] : memref<336x512xbf16, #tpu.memory_space<vmem>>, vector<16x512xbf16>
    %cst_22 = arith.constant dense<0.000000e+00> : vector<8x512xf32>
    %37 = tpu.matmul %35, %36, %cst_22 {dimension_numbers = #tpu.dot_dimension_numbers<[1], [0], [0], [1], [0, 0, 1, 1], [], []>} : vector<8x16xbf16>, vector<16x512xbf16>, vector<8x512xf32> -> vector<8x512xf32>
    %38 = arith.addf %34, %37 : vector<8x512xf32>
    %39 = vector.broadcast %3 : vector<1x512xf32> to vector<8x512xf32>
    %40 = arith.addf %38, %39 : vector<8x512xf32>
    %cst_23 = arith.constant 0.000000e+00 : f32
    %41 = vector.broadcast %cst_23 : f32 to vector<8x512xf32>
    %42 = arith.maximumf %40, %41 : vector<8x512xf32>
    %43 = arith.truncf %42 : vector<8x512xf32> to vector<8x512xbf16>
    %c0_24 = arith.constant 0 : index
    %c0_25 = arith.constant 0 : index
    %44 = vector.load %arg5[%c0_24, %c0_25] : memref<512x256xbf16, #tpu.memory_space<vmem>>, vector<512x256xbf16>
    %cst_26 = arith.constant dense<0.000000e+00> : vector<8x256xf32>
    %45 = tpu.matmul %43, %44, %cst_26 {dimension_numbers = #tpu.dot_dimension_numbers<[1], [0], [0], [1], [0, 0, 1, 1], [], []>} : vector<8x512xbf16>, vector<512x256xbf16>, vector<8x256xf32> -> vector<8x256xf32>
    %46 = vector.broadcast %4 : vector<1x256xf32> to vector<8x256xf32>
    %47 = arith.addf %45, %46 : vector<8x256xf32>
    %cst_27 = arith.constant 0.000000e+00 : f32
    %48 = vector.broadcast %cst_27 : f32 to vector<8x256xf32>
    %49 = arith.maximumf %47, %48 : vector<8x256xf32>
    %50 = arith.truncf %49 : vector<8x256xf32> to vector<8x256xbf16>
    %c256 = arith.constant 256 : index
    %c0_28 = arith.constant 0 : index
    %51 = vector.load %arg6[%c256, %c0_28] : memref<640x128xbf16, #tpu.memory_space<vmem>>, vector<256x128xbf16>
    %cst_29 = arith.constant dense<0.000000e+00> : vector<8x128xf32>
    %52 = tpu.matmul %50, %51, %cst_29 {dimension_numbers = #tpu.dot_dimension_numbers<[1], [0], [0], [1], [0, 0, 1, 1], [], []>} : vector<8x256xbf16>, vector<256x128xbf16>, vector<8x128xf32> -> vector<8x128xf32>
    %53 = vector.broadcast %5 : vector<1x128xf32> to vector<8x128xf32>
    %54 = arith.addf %52, %53 : vector<8x128xf32>
    %cst_30 = arith.constant 0.000000e+00 : f32
    %55 = vector.broadcast %cst_30 : f32 to vector<8x128xf32>
    %56 = arith.maximumf %54, %55 : vector<8x128xf32>
    %57 = arith.truncf %56 : vector<8x128xf32> to vector<8x128xbf16>
    %c512 = arith.constant 512 : index
    %c0_31 = arith.constant 0 : index
    %58 = vector.load %arg6[%c512, %c0_31] : memref<640x128xbf16, #tpu.memory_space<vmem>>, vector<128x128xbf16>
    %cst_32 = arith.constant dense<0.000000e+00> : vector<8x128xf32>
    %59 = tpu.matmul %57, %58, %cst_32 {dimension_numbers = #tpu.dot_dimension_numbers<[1], [0], [0], [1], [0, 0, 1, 1], [], []>} : vector<8x128xbf16>, vector<128x128xbf16>, vector<8x128xf32> -> vector<8x128xf32>
    %60 = vector.broadcast %6 : vector<1x128xf32> to vector<8x128xf32>
    %61 = arith.addf %59, %60 : vector<8x128xf32>
    %c0_33 = arith.constant 0 : index
    %c0_34 = arith.constant 0 : index
    %62 = vector.load %arg8[%c0_33, %c0_34] : memref<8x128xf32, #tpu.memory_space<vmem>>, vector<8x128xf32>
    tpu.vector_store %arg8[%c0_33, %c0_34], %61 {strides = array<i32>} : memref<8x128xf32, #tpu.memory_space<vmem>>, vector<8x128xf32>,
    return
  }
}

</mosaic_0001>

<bundles_post_ra>
// kernel: combined_classifier.1
= control target key start
LH: loop header
LB: loop body
LE: loop exit
PB: predicated region body
PF: predicated region fallthrough
CT: control target
= control target key end

     0   :  { %13 = vsyncpa [#allocation3], 0  ;;  %s3568_s30 = smov [#allocation2]   ;;  %s3569_s10 = smov 128   ;;  %s4570_s0 = inlined_call_operand.vmem [shape: bf16[24,768], index: 0, kind: input, shape index: {}]   ;;  %s4571_s1 = inlined_call_operand.vmem [shape: bf16[8,16], index: 1, kind: input, shape index: {}]   ;;  %s4572_s2 = inlined_call_operand.vmem [shape: bf16[8,256], index: 2, kind: input, shape index: {}]   ;;  %s4573_s3 = inlined_call_operand.vmem [shape: bf16[768,64], index: 3, kind: input, shape index: {}]   ;;  %s4574_s4 = inlined_call_operand.vmem [shape: bf16[336,512], index: 4, kind: input, shape index: {}]   ;;  %s4575_s5 = inlined_call_operand.hbm [shape: bf16[512,256], index: 5, kind: input, shape index: {}]   ;;  %s4576_s6 = inlined_call_operand.vmem [shape: bf16[640,128], index: 6, kind: input, shape index: {}]   ;;  %s4577_s7 = inlined_call_operand.vmem [shape: f32[8,512], index: 7, kind: input, shape index: {}]   ;;  %s4578_s8 = inlined_call_operand.vmem [shape: f32[8,128], index: 8, kind: output, shape index: {}]  }
   0x1   :  { %s28_s29 = sshll.u32 %s4575_s5, 4  ;;  %s30_s9 = sshll.u32 %s3568_s30, 4  ;;  %s29_s29 = int_to_ptr.hbm [resolvable:$true] %s28_s29  ;;  %s31_s9 = int_to_ptr.vmem [resolvable:$true] %s30_s9 }
   0x2   :  { %s3570_s11 = smov 8  }
   0x3   :  { %36 = dma.hbm_to_vmem [thread:$0]  %s29_s29, 8192, %s31_s9, [#allocation3], %s3569_s10, %s3569_s10, %s3570_s11  }
   0x4   :  { %3566 = dma.done.wait [#allocation3], 8192  }
   0x5   :  { %3567 = vsyncadd [#allocation3], 4294959104  ;;  %v3309_v0 = vld [vmem:[%s4573_s3 + $0x38] sm:$0xff]  ;;  %v3308_v4 = vld [vmem:[%s4573_s3 + $0x30] sm:$0xff]  ;;  %vm882_vm0 = vcmask 523264   ;;  %vm1501_vm1 = vcmask 130048  }
   0x6   :  { %v3317_v1 = vld [vmem:[%s4573_s3 + $0x78] sm:$0xff]  ;;  %495 = vmatpush.bf16.msra.mxu0 %v3309_v0  ;;  %v3316_v5 = vld [vmem:[%s4573_s3 + $0x70] sm:$0xff]  ;;  %v3307_v8 = vld [vmem:[%s4573_s3 + $0x28] sm:$0xff] }
   0x7   :  { %v3325_v2 = vld [vmem:[%s4573_s3 + $0xb8] sm:$0xff]  ;;  %513 = vmatpush.bf16.msra.mxu1 %v3317_v1  ;;  %v3324_v6 = vld [vmem:[%s4573_s3 + $0xb0] sm:$0xff]  ;;  %v3315_v9 = vld [vmem:[%s4573_s3 + $0x68] sm:$0xff] }
   0x8   :  { %v3333_v3 = vld [vmem:[%s4573_s3 + $0xf8] sm:$0xff]  ;;  %531 = vmatpush.bf16.msra.mxu2 %v3325_v2  ;;  %v3332_v7 = vld [vmem:[%s4573_s3 + $0xf0] sm:$0xff]  ;;  %v3323_v10 = vld [vmem:[%s4573_s3 + $0xa8] sm:$0xff] }
   0x9   :  { %549 = vmatpush.bf16.msra.mxu3 %v3333_v3  ;;  %v3331_v11 = vld [vmem:[%s4573_s3 + $0xe8] sm:$0xff]  ;;  %v3306_v12 = vld [vmem:[%s4573_s3 + $0x20] sm:$0xff]  ;;  %v3305_v16 = vld [vmem:[%s4573_s3 + $0x18] sm:$0xff] }
   0xa   :  { %496 = vmatpush.bf16.msra.mxu0 %v3308_v4  ;;  %v3314_v13 = vld [vmem:[%s4573_s3 + $0x60] sm:$0xff]  ;;  %v3313_v17 = vld [vmem:[%s4573_s3 + $0x58] sm:$0xff]  ;;  %v3304_v20 = vld [vmem:[%s4573_s3 + $0x10] sm:$0xff] }
   0xb   :  { %514 = vmatpush.bf16.msra.mxu1 %v3316_v5  ;;  %v3322_v14 = vld [vmem:[%s4573_s3 + $0xa0] sm:$0xff]  ;;  %v3321_v18 = vld [vmem:[%s4573_s3 + $0x98] sm:$0xff]  ;;  %v3312_v21 = vld [vmem:[%s4573_s3 + $0x50] sm:$0xff] }
   0xc   :  { %532 = vmatpush.bf16.msra.mxu2 %v3324_v6  ;;  %v3330_v15 = vld [vmem:[%s4573_s3 + $0xe0] sm:$0xff]  ;;  %v3329_v19 = vld [vmem:[%s4573_s3 + $0xd8] sm:$0xff]  ;;  %v3320_v22 = vld [vmem:[%s4573_s3 + $0x90] sm:$0xff] }
   0xd   :  { %550 = vmatpush.bf16.msra.mxu3 %v3332_v7  ;;  %v3328_v23 = vld [vmem:[%s4573_s3 + $0xd0] sm:$0xff]  ;;  %v3303_v24 = vld [vmem:[%s4573_s3 + $0x8] sm:$0xff]  ;;  %v3302_v28 = vld [vmem:[%s4573_s3] sm:$0xff] }
   0xe   :  { %497 = vmatpush.bf16.msra.mxu0 %v3307_v8  ;;  %v3311_v25 = vld [vmem:[%s4573_s3 + $0x48] sm:$0xff]  ;;  %v3310_v29 = vld [vmem:[%s4573_s3 + $0x40] sm:$0xff]  ;;  %v3299_v33 = vld [vmem:[%s4570_s0 + $0x14] sm:$0xf0] }
   0xf   :  { %515 = vmatpush.bf16.msra.mxu1 %v3315_v9  ;;  %v3319_v26 = vld [vmem:[%s4573_s3 + $0x88] sm:$0xff]  ;;  %v3318_v30 = vld [vmem:[%s4573_s3 + $0x80] sm:$0xff]  ;;  %v2316_v35 = vld [vmem:[%s4570_s0 + $0x18] sm:$0xf0] }
  0x10   :  { %533 = vmatpush.bf16.msra.mxu2 %v3323_v10  ;;  %v3327_v27 = vld [vmem:[%s4573_s3 + $0xc8] sm:$0xff]  ;;  %v3326_v31 = vld [vmem:[%s4573_s3 + $0xc0] sm:$0xff]  ;;  %v3341_v40 = vld [vmem:[%s4573_s3 + $0x138] sm:$0xff] }
  0x11   :  { %551 = vmatpush.bf16.msra.mxu3 %v3331_v11  ;;  %v2314_v32 = vld [vmem:[%s4570_s0] sm:$0xf]  ;;  %v3296_v34 = vld [vmem:[%s4570_s0 + $0x4] sm:$0xf]  ;;  %v2322_v36 = vld [vmem:[%s4570_s0 + $0x8] sm:$0xf] }
  0x12   :  { %498 = vmatpush.bf16.msra.mxu0 %v3306_v12  ;;  %v3300_v37 = vld [vmem:[%s4570_s0 + $0x1c] sm:$0xf0]  ;;  %v3297_v38 = vld [vmem:[%s4570_s0 + $0xc] sm:$0xf]  ;;  %v2324_v39 = vld [vmem:[%s4570_s0 + $0x20] sm:$0xf0]  ;;  %v2315_v42 = vor.u32 %v3299_v33, %v2314_v32  ;;  %v2319_v43 = vor.u32 %v3296_v34, %v2316_v35 }
  0x13   :  { %516 = vmatpush.bf16.msra.mxu1 %v3314_v13  ;;  %v3349_v41 = vld [vmem:[%s4573_s3 + $0x178] sm:$0xff]  ;;  %v2323_v44 = vor.u32 %v3300_v37, %v2322_v36  ;;  %v2327_v45 = vor.u32 %v3297_v38, %v2324_v39  ;;  %v3340_v48 = vld [vmem:[%s4573_s3 + $0x130] sm:$0xff]  ;;  %v3339_v52 = vld [vmem:[%s4573_s3 + $0x128] sm:$0xff] }
  0x14   :  { %534 = vmatpush.bf16.msra.mxu2 %v3322_v14  ;;  %v3357_v46 = vld [vmem:[%s4576_s6 + $0x38] sm:$0xff]  ;;  %v3348_v49 = vld [vmem:[%s4573_s3 + $0x170] sm:$0xff]  ;;  %v3347_v53 = vld [vmem:[%s4573_s3 + $0x168] sm:$0xff] }
  0x15   :  { %552 = vmatpush.bf16.msra.mxu3 %v3330_v15  ;;  %v3365_v47 = vld [vmem:[%s4576_s6 + $0x78] sm:$0xff]  ;;  %v3356_v50 = vld [vmem:[%s4576_s6 + $0x30] sm:$0xff]  ;;  %v3355_v56 = vld [vmem:[%s4576_s6 + $0x28] sm:$0xff] }
  0x16   :  { %499 = vmatpush.bf16.msra.mxu0 %v3305_v16  ;;  %v3364_v51 = vld [vmem:[%s4576_s6 + $0x70] sm:$0xff]  ;;  %v57_v55 = vld [vmem:[%s4570_s0 + $0x38] sm:$0xff]  ;;  %v3363_v57 = vld [vmem:[%s4576_s6 + $0x68] sm:$0xff] }
  0x17   :  { %517 = vmatpush.bf16.msra.mxu1 %v3313_v17  ;;  %v56_v54 = vld [vmem:[%s4570_s0 + $0x30] sm:$0xff]  ;;  %v3338_v58 = vld [vmem:[%s4573_s3 + $0x120] sm:$0xff]  ;;  %v179_v62 = vunpack.c.l.b16 %v57_v55  ;;  %v180_v63 = vunpack.c.h.b16 %v57_v55  ;;  %v3337_v2 = vld [vmem:[%s4573_s3 + $0x118] sm:$0xff] }
  0x18   :  { %535 = vmatpush.bf16.msra.mxu2 %v3321_v18  ;;  %v3346_v59 = vld [vmem:[%s4573_s3 + $0x160] sm:$0xff]  ;;  %v177_v60 = vunpack.c.l.b16 %v56_v54  ;;  %v178_v61 = vunpack.c.h.b16 %v56_v54  ;;  %v3345_v3 = vld [vmem:[%s4573_s3 + $0x158] sm:$0xff]  ;;  %v3336_v10 = vld [vmem:[%s4573_s3 + $0x110] sm:$0xff] }
  0x19   :  { %553 = vmatpush.bf16.msra.mxu3 %v3329_v19  ;;  %v3354_v0 = vld [vmem:[%s4576_s6 + $0x20] sm:$0xff]  ;;  %v191_v6 = vpack.c.b16 %v179_v62, %v179_v62  ;;  %v192_v7 = vpack.c.b16 %v180_v63, %v180_v63  ;;  %v3353_v8 = vld [vmem:[%s4576_s6 + $0x18] sm:$0xff]  ;;  %v3344_v11 = vld [vmem:[%s4573_s3 + $0x150] sm:$0xff] }
  0x1a   :  { %500 = vmatpush.bf16.msra.mxu0 %v3304_v20  ;;  %v3362_v1 = vld [vmem:[%s4576_s6 + $0x60] sm:$0xff]  ;;  %v189_v4 = vpack.c.b16 %v177_v60, %v177_v60  ;;  %v190_v5 = vpack.c.b16 %v178_v61, %v178_v61  ;;  %v3361_v9 = vld [vmem:[%s4576_s6 + $0x58] sm:$0xff]  ;;  %v3352_v12 = vld [vmem:[%s4576_s6 + $0x10] sm:$0xff] }
  0x1b   :  { %518 = vmatpush.bf16.msra.mxu1 %v3312_v21  ;;  %v3360_v13 = vld [vmem:[%s4576_s6 + $0x50] sm:$0xff]  ;;  %v3335_v14 = vld [vmem:[%s4573_s3 + $0x108] sm:$0xff]  ;;  %v606_v18 = vld [vmem:[%s4572_s2] sm:$0xff] }
  0x1c   :  { %536 = vmatpush.bf16.msra.mxu2 %v3320_v22  ;;  %v3343_v15 = vld [vmem:[%s4573_s3 + $0x148] sm:$0xff]  ;;  %v3334_v19 = vld [vmem:[%s4573_s3 + $0x100] sm:$0xff]  ;;  %v2330_v21 = vld [vmem:[%s4570_s0 + $0x10] sm:$0xf] }
  0x1d   :  { %554 = vmatpush.bf16.msra.mxu3 %v3328_v23  ;;  %v3351_v16 = vld [vmem:[%s4576_s6 + $0x8] sm:$0xff]  ;;  %v3342_v20 = vld [vmem:[%s4573_s3 + $0x140] sm:$0xff]  ;;  %v3298_v23 = vld [vmem:[%s4570_s0 + $0x14] sm:$0xf] }
  0x1e   :  { %501 = vmatpush.bf16.msra.mxu0 %v3303_v24  ;;  %v3359_v17 = vld [vmem:[%s4576_s6 + $0x48] sm:$0xff]  ;;  %v58_v33 = vld [vmem:[%s4570_s0 + $0x40] sm:$0xff]  ;;  %v3381_v39 = vld [vmem:[%s4574_s4 + $0x74] sm:$0xf0] }
  0x1f   :  { %519 = vmatpush.bf16.msra.mxu1 %v3311_v25  ;;  %v3301_v22 = vld [vmem:[%s4570_s0 + $0x24] sm:$0xf0]  ;;  %v2332_v24 = vld [vmem:[%s4570_s0 + $0x28] sm:$0xf0]  ;;  %v641_v25 = vunpack.c.l.b16 %v606_v18  ;;  %v181_v34 = vunpack.c.l.b16 %v58_v33  ;;  %v182_v35 = vunpack.c.h.b16 %v58_v33  ;;  %v2644_v54 = vld [vmem:[%s4574_s4 + $0xf0] sm:$0xf0] }
  0x20   :  { %537 = vmatpush.bf16.msra.mxu2 %v3319_v26  ;;  %v642_v26 = vunpack.c.h.b16 %v606_v18  ;;  %v2718_v38 = vld [vmem:[%s4574_s4 + $0x68] sm:$0xf]  ;;  %v3413_v60 = vld [vmem:[%s4574_s4 + $0x174] sm:$0xf0]  ;;  %v3378_v33 = vld [vmem:[%s4574_s4 + $0x64] sm:$0xf] }
  0x21   :  { %555 = vmatpush.bf16.msra.mxu3 %v3327_v27  ;;  %v3350_v27 = vld [vmem:[%s4576_s6] sm:$0xff]  ;;  %v193_v36 = vpack.c.b16 %v181_v34, %v181_v34  ;;  %v194_v37 = vpack.c.b16 %v182_v35, %v182_v35  ;;  %v2670_v55 = vld [vmem:[%s4574_s4 + $0x8] sm:$0xf]  ;;  %v3393_v62 = vld [vmem:[%s4574_s4 + $0xd4] sm:$0xf0] }
  0x22   :  { %502 = vmatpush.bf16.msra.mxu0 %v3302_v28  ;;  %v3358_v28 = vld [vmem:[%s4576_s6 + $0x40] sm:$0xff]  ;;  %v644_v32 = vpack.c.b16 %v642_v26, %v642_v26  ;;  %v2634_v61 = vld [vmem:[%s4574_s4 + $0xc8] sm:$0xf]  ;;  %v2712_v34 = vld [vmem:[%s4574_s4 + $0x70] sm:$0xf0] }
  0x23   :  { %520 = vmatpush.bf16.msra.mxu1 %v3310_v29  ;;  %v2331_v29 = vor.u32 %v3301_v22, %v2330_v21  ;;  %v2754_v18 = vld [vmem:[%s4574_s4 + $0x128] sm:$0xf]  ;;  %v3389_v21 = vld [vmem:[%s4574_s4 + $0xb4] sm:$0xf0]  ;;  %v3382_v26 = vld [vmem:[%s4574_s4 + $0x84] sm:$0xf]  ;;  %v2715_v35 = vor.u32 %v3378_v33, %v2712_v34 }
  0x24   :  { %538 = vmatpush.bf16.msra.mxu2 %v3318_v30  ;;  %v2335_v30 = vor.u32 %v3298_v23, %v2332_v24  ;;  %v2594_v24 = vld [vmem:[%s4574_s4 + $0x80] sm:$0xf] }
  0x25   :  { %556 = vmatpush.bf16.msra.mxu3 %v3326_v31  ;;  %503 = vmatmul.bf16.vlgmr.msra.gmra.mxu0 %v2315_v42  ;;  %v643_v31 = vpack.c.b16 %v641_v25, %v641_v25  ;;  %v3377_v42 = vld [vmem:[%s4574_s4 + $0x54] sm:$0xf0]  ;;  %v3384_v25 = vld [vmem:[%s4574_s4 + $0x8c] sm:$0xf0] }
  0x26   :  { %567 = vmatpush.bf16.msrb.mxu0 %v3341_v40  ;;  %521 = vmatmul.bf16.vlgmr.msra.gmra.mxu1 %v2319_v43  ;;  %v2719_v40 = vor.u32 %v3381_v39, %v2718_v38  ;;  %v2602_v38 = vld [vmem:[%s4574_s4 + $0x88] sm:$0xf] }
  0x27   :  { %585 = vmatpush.bf16.msrb.mxu1 %v3349_v41  ;;  %539 = vmatmul.bf16.vlgmr.msra.gmra.mxu2 %v2323_v44  ;;  %v2702_v41 = vld [vmem:[%s4574_s4 + $0x48] sm:$0xf] }
  0x28   :  { %557 = vmatmul.bf16.vlgmr.msra.gmra.mxu3 %v2327_v45  ;;  %743 = vmatpush.bf16.msrb.mxu2 %v3357_v46  ;;  %v2703_v43 = vor.u32 %v3377_v42, %v2702_v41  ;;  %v2650_v44 = vld [vmem:[%s4574_s4 + $0xe8] sm:$0xf]  ;;  %v3397_v45 = vld [vmem:[%s4574_s4 + $0xf4] sm:$0xf0] }
  0x29   :  { %756 = vmatpush.bf16.msrb.mxu3 %v3365_v47  ;;  %v2651_v46 = vor.u32 %v3397_v45, %v2650_v44  ;;  %v2686_v47 = vld [vmem:[%s4574_s4 + $0x28] sm:$0xf]  ;;  %v3385_v42 = vld [vmem:[%s4574_s4 + $0x94] sm:$0xf0] }
  0x2a   :  { %568 = vmatpush.bf16.msrb.mxu0 %v3340_v48  ;;  %v3373_v48 = vld [vmem:[%s4574_s4 + $0x34] sm:$0xf0]  ;;  %v2603_v45 = vor.u32 %v3385_v42, %v2602_v38 }
  0x2b   :  { %586 = vmatpush.bf16.msrb.mxu1 %v3348_v49  ;;  %v2687_v49 = vor.u32 %v3373_v48, %v2686_v47  ;;  %v2652_v47 = vld [vmem:[%s4574_s4 + $0xf8] sm:$0xf0]  ;;  %v2694_v48 = vld [vmem:[%s4574_s4 + $0x40] sm:$0xf] }
  0x2c   :  { %744 = vmatpush.bf16.msrb.mxu2 %v3356_v50  ;;  %v2642_v50 = vld [vmem:[%s4574_s4 + $0xe0] sm:$0xf] }
  0x2d   :  { %757 = vmatpush.bf16.msrb.mxu3 %v3364_v51  ;;  %v3396_v51 = vld [vmem:[%s4574_s4 + $0xec] sm:$0xf0] }
  0x2e   :  { %569 = vmatpush.bf16.msrb.mxu0 %v3339_v52  ;;  %v3394_v52 = vld [vmem:[%s4574_s4 + $0xe4] sm:$0xf] }
  0x2f   :  { %587 = vmatpush.bf16.msrb.mxu1 %v3347_v53  ;;  %v2643_v53 = vor.u32 %v3396_v51, %v2642_v50  ;;  %v3376_v50 = vld [vmem:[%s4574_s4 + $0x4c] sm:$0xf0]  ;;  %v3374_v51 = vld [vmem:[%s4574_s4 + $0x44] sm:$0xf] }
  0x30   :  { %745 = vmatpush.bf16.msrb.mxu2 %v3355_v56  ;;  %v3369_v56 = vld [vmem:[%s4574_s4 + $0x14] sm:$0xf0] }
  0x31   :  { %758 = vmatpush.bf16.msrb.mxu3 %v3363_v57  ;;  %v2647_v57 = vor.u32 %v3394_v52, %v2644_v54  ;;  %v2696_v52 = vld [vmem:[%s4574_s4 + $0x50] sm:$0xf0] }
  0x32   :  { %570 = vmatpush.bf16.msrb.mxu0 %v3338_v58  ;;  %v2671_v58 = vor.u32 %v3369_v56, %v2670_v55  ;;  %v2699_v54 = vor.u32 %v3374_v51, %v2696_v52  ;;  %v3391_v55 = vld [vmem:[%s4574_s4 + $0xcc] sm:$0xf]  ;;  %v2636_v56 = vld [vmem:[%s4574_s4 + $0xd8] sm:$0xf0]  ;;  %v3437_v51 = vld [vmem:[%s4574_s4 + $0x234] sm:$0xf0] }
  0x33   :  { %588 = vmatpush.bf16.msrb.mxu1 %v3346_v59  ;;  %v2786_v59 = vld [vmem:[%s4574_s4 + $0x168] sm:$0xf]  ;;  %v2778_v52 = vld [vmem:[%s4574_s4 + $0x160] sm:$0xf] }
  0x34   :  { %746 = vmatpush.bf16.msrb.mxu2 %v3354_v0  ;;  %v2787_v63 = vor.u32 %v3413_v60, %v2786_v59  ;;  %v2626_v0 = vld [vmem:[%s4574_s4 + $0xc0] sm:$0xf]  ;;  %v3372_v59 = vld [vmem:[%s4574_s4 + $0x2c] sm:$0xf0]  ;;  %v3370_v60 = vld [vmem:[%s4574_s4 + $0x24] sm:$0xf] }
  0x35   :  { %759 = vmatpush.bf16.msrb.mxu3 %v3362_v1  ;;  %508 = vmatmul.bf16.gmra.mxu0 %v189_v4  ;;  %v2635_v1 = vor.u32 %v3393_v62, %v2634_v61  ;;  %v2628_v4 = vld [vmem:[%s4574_s4 + $0xd0] sm:$0xf0] }
  0x36   :  { %571 = vmatpush.bf16.msrb.mxu0 %v3337_v2  ;;  %526 = vmatmul.bf16.gmra.mxu1 %v190_v5  ;;  %v3392_v2 = vld [vmem:[%s4574_s4 + $0xcc] sm:$0xf0]  ;;  %v2680_v62 = vld [vmem:[%s4574_s4 + $0x30] sm:$0xf0] }
  0x37   :  { %589 = vmatpush.bf16.msrb.mxu1 %v3345_v3  ;;  %544 = vmatmul.bf16.gmra.mxu2 %v191_v6  ;;  %v3390_v3 = vld [vmem:[%s4574_s4 + $0xc4] sm:$0xf]  ;;  %v2627_v5 = vor.u32 %v3392_v2, %v2626_v0  ;;  %v2683_v0 = vor.u32 %v3370_v60, %v2680_v62 }
  0x38   :  { %562 = vmatmul.bf16.gmra.mxu3 %v192_v7  ;;  %747 = vmatpush.bf16.msrb.mxu2 %v3353_v8  ;;  %v2631_v6 = vor.u32 %v3390_v3, %v2628_v4  ;;  %v2770_v7 = vld [vmem:[%s4574_s4 + $0x148] sm:$0xf]  ;;  %v3409_v8 = vld [vmem:[%s4574_s4 + $0x154] sm:$0xf0]  ;;  %v3387_v3 = vld [vmem:[%s4574_s4 + $0xac] sm:$0xf] }
  0x39   :  { %760 = vmatpush.bf16.msrb.mxu3 %v3361_v9  ;;  %v2771_v9 = vor.u32 %v3409_v8, %v2770_v7  ;;  %v2620_v4 = vld [vmem:[%s4574_s4 + $0xb8] sm:$0xf0]  ;;  %v2662_v8 = vld [vmem:[%s4574_s4] sm:$0xf] }
  0x3a   :  { %572 = vmatpush.bf16.msrb.mxu0 %v3336_v10  ;;  %v2610_v10 = vld [vmem:[%s4574_s4 + $0xa0] sm:$0xf]  ;;  %v2623_v7 = vor.u32 %v3387_v3, %v2620_v4 }
  0x3b   :  { %590 = vmatpush.bf16.msrb.mxu1 %v3344_v11  ;;  %v3388_v11 = vld [vmem:[%s4574_s4 + $0xac] sm:$0xf0]  ;;  %v2762_v3 = vld [vmem:[%s4574_s4 + $0x140] sm:$0xf] }
  0x3c   :  { %748 = vmatpush.bf16.msrb.mxu2 %v3352_v12  ;;  %v3386_v12 = vld [vmem:[%s4574_s4 + $0xa4] sm:$0xf] }
  0x3d   :  { %761 = vmatpush.bf16.msrb.mxu3 %v3360_v13 }
  0x3e   :  { %573 = vmatpush.bf16.msrb.mxu0 %v3335_v14 }
  0x3f   :  { %591 = vmatpush.bf16.msrb.mxu1 %v3343_v15  ;;  %v2611_v15 = vor.u32 %v3388_v11, %v2610_v10  ;;  %v3366_v10 = vld [vmem:[%s4574_s4 + $0x4] sm:$0xf] }
  0x40   :  { %749 = vmatpush.bf16.msrb.mxu2 %v3351_v16  ;;  %v2612_v16 = vld [vmem:[%s4574_s4 + $0xb0] sm:$0xf0] }
  0x41   :  { %762 = vmatpush.bf16.msrb.mxu3 %v3359_v17  ;;  %v2615_v17 = vor.u32 %v3386_v12, %v2612_v16 }
  0x42   :  { %574 = vmatpush.bf16.msrb.mxu0 %v3334_v19  ;;  %v3405_v19 = vld [vmem:[%s4574_s4 + $0x134] sm:$0xf0] }
  0x43   :  { %592 = vmatpush.bf16.msrb.mxu1 %v3342_v20  ;;  %v2618_v20 = vld [vmem:[%s4574_s4 + $0xa8] sm:$0xf]  ;;  %v2755_v22 = vor.u32 %v3405_v19, %v2754_v18  ;;  %v2604_v18 = vld [vmem:[%s4574_s4 + $0x98] sm:$0xf0] }
  0x44   :  { %750 = vmatpush.bf16.msrb.mxu2 %v3350_v27  ;;  %v2619_v23 = vor.u32 %v3389_v21, %v2618_v20  ;;  %v2595_v27 = vor.u32 %v3384_v25, %v2594_v24 }
  0x45   :  { %763 = vmatpush.bf16.msrb.mxu3 %v3358_v28  ;;  %575 = vmatmul.bf16.vlgmr.msrb.gmra.mxu0 %v2331_v29  ;;  %v2596_v28 = vld [vmem:[%s4574_s4 + $0x90] sm:$0xf0]  ;;  %v2710_v29 = vld [vmem:[%s4574_s4 + $0x60] sm:$0xf] }
  0x46   :  { %593 = vmatmul.bf16.vlgmr.msrb.gmra.mxu1 %v2335_v30  ;;  %1051 = vmatpush.bf16.msra.mxu0 %v2719_v40  ;;  %v3380_v30 = vld [vmem:[%s4574_s4 + $0x6c] sm:$0xf0] }
  0x47   :  { %751 = vmatmul.bf16.vlgmr.msrb.gmra.mxu2 %v643_v31  ;;  %916 = vmatpush.bf16.msra.mxu1 %v2651_v46  ;;  %v2599_v31 = vor.u32 %v3382_v26, %v2596_v28  ;;  %v3395_v46 = vld [vmem:[%s4574_s4 + $0xec] sm:$0xf] }
  0x48   :  { %764 = vmatmul.bf16.vlgmr.msrb.gmra.mxu3 %v644_v32  ;;  %890 = vmatpush.bf16.msra.mxu2 %v2643_v53  ;;  %v2711_v32 = vor.u32 %v3380_v30, %v2710_v29  ;;  %v2695_v53 = vor.u32 %v3376_v50, %v2694_v48  ;;  %v2886_v50 = vld [vmem:[%s4574_s4 + $0x228] sm:$0xf] }
  0x49   :  { %903 = vmatpush.bf16.msra.mxu3 %v2647_v57  ;;  %v2639_v57 = vor.u32 %v3391_v55, %v2636_v56  ;;  %v2780_v55 = vld [vmem:[%s4574_s4 + $0x170] sm:$0xf0]  ;;  %v2887_v60 = vor.u32 %v3437_v51, %v2886_v50  ;;  %v2910_v51 = vld [vmem:[%s4574_s4 + $0x260] sm:$0xf] }
  0x4a   :  { %1052 = vmatpush.bf16.msra.mxu0 %v2703_v43 }
  0x4b   :  { %917 = vmatpush.bf16.msra.mxu1 %v2635_v1 }
  0x4c   :  { %891 = vmatpush.bf16.msra.mxu2 %v2627_v5 }
  0x4d   :  { %904 = vmatpush.bf16.msra.mxu3 %v2631_v6 }
  0x4e   :  { %1053 = vmatpush.bf16.msra.mxu0 %v2687_v49  ;;  %v2655_v49 = vor.u32 %v3395_v46, %v2652_v47 }
  0x4f   :  { %918 = vmatpush.bf16.msra.mxu1 %v2619_v23 }
  0x50   :  { %892 = vmatpush.bf16.msra.mxu2 %v2611_v15  ;;  %v2664_v15 = vld [vmem:[%s4574_s4 + $0x10] sm:$0xf0] }
  0x51   :  { %905 = vmatpush.bf16.msra.mxu3 %v2615_v17  ;;  %v2667_v16 = vor.u32 %v3366_v10, %v2664_v15  ;;  %v3383_v17 = vld [vmem:[%s4574_s4 + $0x8c] sm:$0xf]  ;;  %v2704_v10 = vld [vmem:[%s4574_s4 + $0x58] sm:$0xf0] }
  0x52   :  { %1054 = vmatpush.bf16.msra.mxu0 %v2671_v58  ;;  %v2678_v58 = vld [vmem:[%s4574_s4 + $0x20] sm:$0xf]  ;;  %v2607_v19 = vor.u32 %v3383_v17, %v2604_v18 }
  0x53   :  { %919 = vmatpush.bf16.msra.mxu1 %v2603_v45  ;;  %v2679_v61 = vor.u32 %v3372_v59, %v2678_v58  ;;  %v3379_v58 = vld [vmem:[%s4574_s4 + $0x6c] sm:$0xf]  ;;  %v2720_v59 = vld [vmem:[%s4574_s4 + $0x78] sm:$0xf0] }
  0x54   :  { %893 = vmatpush.bf16.msra.mxu2 %v2595_v27  ;;  %v2723_v4 = vor.u32 %v3379_v58, %v2720_v59  ;;  %v2788_v58 = vld [vmem:[%s4574_s4 + $0x178] sm:$0xf0] }
  0x55   :  { %580 = vmatmul.bf16.gmra.mxu0 %v193_v36  ;;  %v2738_v36 = vld [vmem:[%s4574_s4 + $0x108] sm:$0xf]  ;;  %906 = vmatpush.bf16.msra.mxu3 %v2599_v31 }
  0x56   :  { %598 = vmatmul.bf16.gmra.mxu1 %v194_v37  ;;  %1202 = vmatpush.bf16.msrb.mxu0 %v2787_v63  ;;  %v3401_v37 = vld [vmem:[%s4574_s4 + $0x114] sm:$0xf0]  ;;  %v4040_v63 = vld [vmem:[%s4577_s7] sm:$0xff] }
  0x57   :  { %v2739_v41 = vor.u32 %v3401_v37, %v2738_v36  ;;  %929 = vmatpush.bf16.msrb.mxu1 %v2655_v49  ;;  %v155_v11 = vperm.slane %v4040_v63, 0 }
  0x58   :  { %1025 = vmatpush.bf16.msrb.mxu2 %v2711_v32 }
  0x59   :  { %1038 = vmatpush.bf16.msrb.mxu3 %v2715_v35 }
  0x5a   :  { %1203 = vmatpush.bf16.msrb.mxu0 %v2771_v9  ;;  %v3368_v9 = vld [vmem:[%s4574_s4 + $0xc] sm:$0xf0] }
  0x5b   :  { %930 = vmatpush.bf16.msrb.mxu1 %v2639_v57  ;;  %v2663_v12 = vor.u32 %v3368_v9, %v2662_v8  ;;  %v3375_v9 = vld [vmem:[%s4574_s4 + $0x4c] sm:$0xf] }
  0x5c   :  { %1026 = vmatpush.bf16.msrb.mxu2 %v2695_v53  ;;  %v3412_v53 = vld [vmem:[%s4574_s4 + $0x16c] sm:$0xf0] }
  0x5d   :  { %1039 = vmatpush.bf16.msrb.mxu3 %v2699_v54  ;;  %v3410_v54 = vld [vmem:[%s4574_s4 + $0x164] sm:$0xf]  ;;  %v2779_v62 = vor.u32 %v3412_v53, %v2778_v52  ;;  %v3444_v52 = vld [vmem:[%s4574_s4 + $0x26c] sm:$0xf0] }
  0x5e   :  { %1204 = vmatpush.bf16.msrb.mxu0 %v2755_v22  ;;  %v3442_v53 = vld [vmem:[%s4574_s4 + $0x264] sm:$0xf] }
  0x5f   :  { %931 = vmatpush.bf16.msrb.mxu1 %v2623_v7  ;;  %v2764_v7 = vld [vmem:[%s4574_s4 + $0x150] sm:$0xf0] }
  0x60   :  { %1027 = vmatpush.bf16.msrb.mxu2 %v2679_v61 }
  0x61   :  { %1040 = vmatpush.bf16.msrb.mxu3 %v2683_v0  ;;  %v2783_v0 = vor.u32 %v3410_v54, %v2780_v55  ;;  %v2822_v54 = vld [vmem:[%s4574_s4 + $0x1a8] sm:$0xf]  ;;  %v3421_v55 = vld [vmem:[%s4574_s4 + $0x1b4] sm:$0xf0] }
  0x62   :  { %1205 = vmatpush.bf16.msrb.mxu0 %v2739_v41  ;;  %v3441_v41 = vld [vmem:[%s4574_s4 + $0x254] sm:$0xf0] }
  0x63   :  { %932 = vmatpush.bf16.msrb.mxu1 %v2607_v19 }
  0x64   :  { %1028 = vmatpush.bf16.msrb.mxu2 %v2663_v12 }
  0x65   :  { %1041 = vmatpush.bf16.msrb.mxu3 %v2667_v16 }
  0xa2   :  { %v3940_v13 = vpop.f32.mrf.mxu0 }
  0xa3   :  { %v3942_v14 = vpop.f32.mrf.mxu1  ;;  %v505_v20 = vadd.f32 %v3940_v13, %v155_v11  ;;  %v2918_v13 = vld [vmem:[%s4574_s4 + $0x268] sm:$0xf] }
  0xa5   :  { %v523_v25 = vadd.f32 %v3942_v14, %v505_v20  ;;  %v3445_v14 = vld [vmem:[%s4574_s4 + $0x274] sm:$0xf0] }
  0xa6   :  { %v2919_v37 = vor.u32 %v3445_v14, %v2918_v13  ;;  %v2838_v13 = vld [vmem:[%s4574_s4 + $0x1c8] sm:$0xf]  ;;  %v3425_v14 = vld [vmem:[%s4574_s4 + $0x1d4] sm:$0xf0] }
  0xaa   :  { %v3992_v39 = vpop.f32.mrf.mxu2  ;;  %v506_v43 = vpop.f32.mrf.mxu0 }
  0xab   :  { %v3994_v40 = vpop.f32.mrf.mxu3  ;;  %v3999_v44 = vpop.f32.mrf.mxu1  ;;  %v541_v26 = vadd.f32 %v3992_v39, %v523_v25  ;;  %v507_v27 = vadd.f32 %v506_v43, %v155_v11  ;;  %v3404_v25 = vld [vmem:[%s4574_s4 + $0x12c] sm:$0xf0] }
  0xad   :  { %v559_v28 = vadd.f32 %v3994_v40, %v541_v26  ;;  %v525_v33 = vadd.f32 %v3999_v44, %v507_v27  ;;  %v2902_v40 = vld [vmem:[%s4574_s4 + $0x248] sm:$0xf]  ;;  %v3402_v26 = vld [vmem:[%s4574_s4 + $0x124] sm:$0xf]  ;;  %v2748_v27 = vld [vmem:[%s4574_s4 + $0x130] sm:$0xf0] }
  0xae   :  { %v2903_v47 = vor.u32 %v3441_v41, %v2902_v40  ;;  %v2732_v40 = vld [vmem:[%s4574_s4 + $0x110] sm:$0xf0]  ;;  %v3367_v41 = vld [vmem:[%s4574_s4 + $0xc] sm:$0xf] }
  0xb2   :  { %v542_v1 = vpop.f32.mrf.mxu2  ;;  %v509_v5 = vpop.f32.mrf.mxu0 }
  0xb3   :  { %v560_v2 = vpop.f32.mrf.mxu3  ;;  %v527_v6 = vpop.f32.mrf.mxu1  ;;  %v543_v35 = vadd.f32 %v542_v1, %v525_v33  ;;  %v510_v38 = vadd.f32 %v509_v5, %v155_v11  ;;  %v2870_v1 = vld [vmem:[%s4574_s4 + $0x208] sm:$0xf]  ;;  %v3408_v5 = vld [vmem:[%s4574_s4 + $0x14c] sm:$0xf0] }
  0xb4   :  { %v2763_v19 = vor.u32 %v3408_v5, %v2762_v3  ;;  %v3438_v3 = vld [vmem:[%s4574_s4 + $0x244] sm:$0xf]  ;;  %v2806_v5 = vld [vmem:[%s4574_s4 + $0x188] sm:$0xf] }
  0xb5   :  { %v561_v42 = vadd.f32 %v560_v2, %v543_v35  ;;  %v528_v48 = vadd.f32 %v527_v6, %v510_v38  ;;  %v3433_v2 = vld [vmem:[%s4574_s4 + $0x214] sm:$0xf0]  ;;  %v3406_v6 = vld [vmem:[%s4574_s4 + $0x144] sm:$0xf]  ;;  %v2730_v35 = vld [vmem:[%s4574_s4 + $0x100] sm:$0xf] }
  0xb6   :  { %v2871_v17 = vor.u32 %v3433_v2, %v2870_v1  ;;  %v2767_v20 = vor.u32 %v3406_v6, %v2764_v7  ;;  %v3398_v38 = vld [vmem:[%s4574_s4 + $0x104] sm:$0xf]  ;;  %v2823_v1 = vor.u32 %v3421_v55, %v2822_v54  ;;  %v3440_v2 = vld [vmem:[%s4574_s4 + $0x24c] sm:$0xf0]  ;;  %v3417_v6 = vld [vmem:[%s4574_s4 + $0x194] sm:$0xf0] }
  0xb7   :  { %v2735_v50 = vor.u32 %v3398_v38, %v2732_v40  ;;  %v3407_v7 = vld [vmem:[%s4574_s4 + $0x14c] sm:$0xf]  ;;  %v2848_v38 = vld [vmem:[%s4574_s4 + $0x1f0] sm:$0xf0]  ;;  %v2814_v55 = vld [vmem:[%s4574_s4 + $0x1a0] sm:$0xf] }
  0xb8   :  { %v3443_v40 = vld [vmem:[%s4574_s4 + $0x26c] sm:$0xf] }
  0xba   :  { %v545_v21 = vpop.f32.mrf.mxu2  ;;  %v511_v23 = vpop.f32.mrf.mxu0 }
  0xbb   :  { %v563_v22 = vpop.f32.mrf.mxu3  ;;  %v529_v24 = vpop.f32.mrf.mxu1  ;;  %v546_v56 = vadd.f32 %v545_v21, %v528_v48  ;;  %v2854_v21 = vld [vmem:[%s4574_s4 + $0x1e8] sm:$0xf]  ;;  %v2746_v23 = vld [vmem:[%s4574_s4 + $0x120] sm:$0xf] }
  0xbc   :  { %v2707_v24 = vor.u32 %v3375_v9, %v2704_v10  ;;  %v2747_v33 = vor.u32 %v3404_v25, %v2746_v23  ;;  %v2934_v9 = vld [vmem:[%s4574_s4 + $0x288] sm:$0xf]  ;;  %v3449_v10 = vld [vmem:[%s4574_s4 + $0x294] sm:$0xf0] }
  0xbd   :  { %v564_v8 = vadd.f32 %v563_v22, %v546_v56  ;;  %v3429_v22 = vld [vmem:[%s4574_s4 + $0x1f4] sm:$0xf0] }
  0xc2   :  { %v547_v29 = vpop.f32.mrf.mxu2  ;;  %v576_v31 = vpop.f32.mrf.mxu0 }
  0xc3   :  { %v565_v30 = vpop.f32.mrf.mxu3  ;;  %v594_v32 = vpop.f32.mrf.mxu1  ;;  %v577_v34 = vadd.f32 %v576_v31, %v559_v28  ;;  %v3371_v29 = vld [vmem:[%s4574_s4 + $0x2c] sm:$0xf]  ;;  %v2855_v31 = vor.u32 %v3429_v22, %v2854_v21  ;;  %v2756_v22 = vld [vmem:[%s4574_s4 + $0x138] sm:$0xf0] }
  0xc4   :  { %v2688_v30 = vld [vmem:[%s4574_s4 + $0x38] sm:$0xf0]  ;;  %v3403_v21 = vld [vmem:[%s4574_s4 + $0x12c] sm:$0xf] }
  0xc5   :  { %v595_v36 = vadd.f32 %v594_v32, %v577_v34  ;;  %v2751_v34 = vor.u32 %v3402_v26, %v2748_v27  ;;  %v2862_v26 = vld [vmem:[%s4574_s4 + $0x200] sm:$0xf]  ;;  %v3432_v27 = vld [vmem:[%s4574_s4 + $0x20c] sm:$0xf0] }
  0xc7   :  { %v4078_v39 = vpack.c.bf16 %v595_v36, %v595_v36  ;;  %v2691_v36 = vor.u32 %v3371_v29, %v2688_v30  ;;  %v3430_v29 = vld [vmem:[%s4574_s4 + $0x204] sm:$0xf]  ;;  %v2864_v30 = vld [vmem:[%s4574_s4 + $0x210] sm:$0xf0] }
  0xc9   :  { %2726 = vmatmul.msk.bf16.vlgmr.msra.gmra.mxu0 %vm882_vm0, %v4078_v39 }
  0xca   :  { %v4088_v43 = vpop.f32.mrf.mxu2  ;;  %v578_v45 = vpop.f32.mrf.mxu0  ;;  %1446 = vmatpush.bf16.msra.mxu0 %v2919_v37  ;;  %v3400_v37 = vld [vmem:[%s4574_s4 + $0x10c] sm:$0xf0] }
  0xcb   :  { %v4090_v44 = vpop.f32.mrf.mxu3  ;;  %v596_v46 = vpop.f32.mrf.mxu1  ;;  %v579_v49 = vadd.f32 %v578_v45, %v561_v42  ;;  %v2672_v42 = vld [vmem:[%s4574_s4 + $0x18] sm:$0xf0]  ;;  %v2839_v45 = vor.u32 %v3425_v14, %v2838_v13  ;;  %v2867_v13 = vor.u32 %v3430_v29, %v2864_v30  ;;  %v2846_v14 = vld [vmem:[%s4574_s4 + $0x1e0] sm:$0xf] }
  0xcc   :  { %v2675_v56 = vor.u32 %v3367_v41, %v2672_v42  ;;  %v2920_v41 = vld [vmem:[%s4574_s4 + $0x278] sm:$0xf0] }
  0xcd   :  { %v597_v57 = vadd.f32 %v596_v46, %v579_v49  ;;  %v639_v46 = vperm.slane %v4040_v63, 1  ;;  %v2731_v49 = vor.u32 %v3400_v37, %v2730_v35  ;;  %v2912_v63 = vld [vmem:[%s4574_s4 + $0x270] sm:$0xf0]  ;;  %v3428_v35 = vld [vmem:[%s4574_s4 + $0x1ec] sm:$0xf0] }
  0xce   :  { %1447 = vmatpush.bf16.msra.mxu0 %v2903_v47  ;;  %v2847_v42 = vor.u32 %v3428_v35, %v2846_v14  ;;  %v3495_v14 = vld [vmem:[#allocation2 + $0x164] sm:$0xf0] }
  0xcf   :  { %v4116_v61 = vpack.c.bf16 %v597_v57, %v597_v57  ;;  %v3411_v57 = vld [vmem:[%s4574_s4 + $0x16c] sm:$0xf]  ;;  %v753_v59 = vadd.f32 %v4088_v43, %v639_v46  ;;  %v2896_v43 = vld [vmem:[%s4574_s4 + $0x250] sm:$0xf0]  ;;  %v2923_v46 = vor.u32 %v3443_v40, %v2920_v41  ;;  %v3106_v40 = vld [vmem:[#allocation2 + $0x140] sm:$0xf] }
  0xd0   :  { %v3491_v41 = vld [vmem:[#allocation2 + $0x144] sm:$0xf0] }
  0xd1   :  { %2656 = vmatmul.msk.bf16.vlgmr.msra.gmra.mxu2 %vm882_vm0, %v4116_v61  ;;  %2657 = vmatmul.msk.bf16.vlgmr.msra.gmra.mxu3 %vm882_vm0, %v4116_v61 }
  0xd2   :  { %v754_v11 = vpop.f32.mrf.mxu2  ;;  %2658 = vmatmul.msk.bf16.vlgmr.msra.gmra.mxu1 %vm882_vm0, %v4116_v61  ;;  %v581_v15 = vpop.f32.mrf.mxu0  ;;  %1448 = vmatpush.bf16.msra.mxu0 %v2887_v60  ;;  %v2911_v60 = vor.u32 %v3444_v52, %v2910_v51  ;;  %v3439_v51 = vld [vmem:[%s4574_s4 + $0x24c] sm:$0xf]  ;;  %v2904_v52 = vld [vmem:[%s4574_s4 + $0x258] sm:$0xf0] }
  0xd3   :  { %v767_v12 = vpop.f32.mrf.mxu3  ;;  %v599_v16 = vpop.f32.mrf.mxu1  ;;  %v582_v18 = vadd.f32 %v581_v15, %v564_v8  ;;  %1176 = vmatpush.bf16.msra.mxu2 %v2779_v62  ;;  %1189 = vmatpush.bf16.msra.mxu3 %v2783_v0  ;;  %v2894_v62 = vld [vmem:[%s4574_s4 + $0x240] sm:$0xf]  ;;  %v2915_v0 = vor.u32 %v3442_v53, %v2912_v63  ;;  %v2772_v8 = vld [vmem:[%s4574_s4 + $0x158] sm:$0xf0]  ;;  %v766_v11 = vadd.f32 %v4090_v44, %v753_v59  ;;  %v2880_v44 = vld [vmem:[%s4574_s4 + $0x230] sm:$0xf0] }
  0xd4   :  { %1064 = vmatpush.bf16.msra.mxu1 %v2723_v4  ;;  %v2791_v4 = vor.u32 %v3411_v57, %v2788_v58  ;;  %v2895_v12 = vor.u32 %v3440_v2, %v2894_v62  ;;  %v2899_v15 = vor.u32 %v3438_v3, %v2896_v43  ;;  %v2907_v54 = vor.u32 %v3439_v51, %v2904_v52  ;;  %v3418_v57 = vld [vmem:[%s4574_s4 + $0x1a4] sm:$0xf]  ;;  %v3435_v58 = vld [vmem:[%s4574_s4 + $0x22c] sm:$0xf]  ;;  %v2888_v59 = vld [vmem:[%s4574_s4 + $0x238] sm:$0xf0] }
  0xd5   :  { %v600_v28 = vadd.f32 %v599_v16, %v582_v18  ;;  %v2807_v16 = vor.u32 %v3417_v6, %v2806_v5  ;;  %v3436_v18 = vld [vmem:[%s4574_s4 + $0x22c] sm:$0xf0]  ;;  %v4281_v23 = vpack.c.bf16 %v766_v11, %v766_v11  ;;  %v2891_v2 = vor.u32 %v3435_v58, %v2888_v59  ;;  %v3414_v43 = vld [vmem:[%s4574_s4 + $0x184] sm:$0xf]  ;;  %v3431_v5 = vld [vmem:[%s4574_s4 + $0x20c] sm:$0xf] }
  0xd6   :  { %1449 = vmatpush.bf16.msra.mxu0 %v2871_v17  ;;  %v2878_v17 = vld [vmem:[%s4574_s4 + $0x220] sm:$0xf]  ;;  %v3416_v3 = vld [vmem:[%s4574_s4 + $0x18c] sm:$0xf0]  ;;  %v2872_v6 = vld [vmem:[%s4574_s4 + $0x218] sm:$0xf0] }
  0xd7   :  { %v4172_v32 = vpack.c.bf16 %v600_v28, %v600_v28  ;;  %1177 = vmatpush.bf16.msra.mxu2 %v2763_v19  ;;  %1190 = vmatpush.bf16.msra.mxu3 %v2767_v20  ;;  %v2775_v19 = vor.u32 %v3407_v7, %v2772_v8  ;;  %v2935_v20 = vor.u32 %v3449_v10, %v2934_v9  ;;  %v2926_v7 = vld [vmem:[%s4574_s4 + $0x280] sm:$0xf]  ;;  %v3448_v8 = vld [vmem:[%s4574_s4 + $0x28c] sm:$0xf0]  ;;  %v3446_v9 = vld [vmem:[%s4574_s4 + $0x284] sm:$0xf] }
  0xd8   :  { %1065 = vmatpush.bf16.msra.mxu1 %v2707_v24  ;;  %v2879_v24 = vor.u32 %v3436_v18, %v2878_v17  ;;  %v2759_v28 = vor.u32 %v3403_v21, %v2756_v22  ;;  %v2928_v10 = vld [vmem:[%s4574_s4 + $0x290] sm:$0xf0]  ;;  %v3427_v17 = vld [vmem:[%s4574_s4 + $0x1ec] sm:$0xf]  ;;  %v2856_v18 = vld [vmem:[%s4574_s4 + $0x1f8] sm:$0xf0] }
  0xd9   :  { %2794 = vmatmul.msk.bf16.vlgmr.msrb.gmra.mxu0 %vm882_vm0, %v4172_v32  ;;  %v3419_v22 = vld [vmem:[%s4574_s4 + $0x1ac] sm:$0xf]  ;;  %v3082_v51 = vld [vmem:[#allocation2 + $0x110] sm:$0xf]  ;;  %v3485_v52 = vld [vmem:[#allocation2 + $0x114] sm:$0xf0] }
  0xda   :  { %1450 = vmatpush.bf16.msra.mxu0 %v2855_v31  ;;  %v583_v47 = vpop.f32.mrf.mxu0  ;;  %v3399_v31 = vld [vmem:[%s4574_s4 + $0x10c] sm:$0xf] }
  0xdb   :  { %v601_v48 = vpop.f32.mrf.mxu1  ;;  %1178 = vmatpush.bf16.msra.mxu2 %v2747_v33  ;;  %1191 = vmatpush.bf16.msra.mxu3 %v2751_v34  ;;  %v2740_v33 = vld [vmem:[%s4574_s4 + $0x118] sm:$0xf0]  ;;  %v2863_v34 = vor.u32 %v3432_v27, %v2862_v26  ;;  %v2830_v47 = vld [vmem:[%s4574_s4 + $0x1c0] sm:$0xf]  ;;  %v3415_v26 = vld [vmem:[%s4574_s4 + $0x18c] sm:$0xf] }
  0xdc   :  { %1066 = vmatpush.bf16.msra.mxu1 %v2691_v36  ;;  %v3426_v36 = vld [vmem:[%s4574_s4 + $0x1e4] sm:$0xf]  ;;  %v2743_v37 = vor.u32 %v3399_v31, %v2740_v33  ;;  %v3424_v48 = vld [vmem:[%s4574_s4 + $0x1cc] sm:$0xf0]  ;;  %v3447_v27 = vld [vmem:[%s4574_s4 + $0x28c] sm:$0xf] }
  0xdd   :  { %v2831_v53 = vor.u32 %v3424_v48, %v2830_v47  ;;  %v3130_v31 = vld [vmem:[#allocation2 + $0x170] sm:$0xf]  ;;  %v3497_v33 = vld [vmem:[#allocation2 + $0x174] sm:$0xf0]  ;;  %v3090_v47 = vld [vmem:[#allocation2 + $0x120] sm:$0xf] }
  0xde   :  { %1451 = vmatpush.bf16.msra.mxu0 %v2839_v45  ;;  %v2851_v45 = vor.u32 %v3426_v36, %v2848_v38  ;;  %v3114_v36 = vld [vmem:[#allocation2 + $0x150] sm:$0xf]  ;;  %v3487_v48 = vld [vmem:[#allocation2 + $0x124] sm:$0xf0] }
  0xdf   :  { %1179 = vmatpush.bf16.msra.mxu2 %v2731_v49  ;;  %1192 = vmatpush.bf16.msra.mxu3 %v2735_v50  ;;  %v3422_v49 = vld [vmem:[%s4574_s4 + $0x1c4] sm:$0xf]  ;;  %v2832_v50 = vld [vmem:[%s4574_s4 + $0x1d0] sm:$0xf0] }
  0xe0   :  { %1067 = vmatpush.bf16.msra.mxu1 %v2675_v56  ;;  %v2835_v63 = vor.u32 %v3422_v49, %v2832_v50  ;;  %v3420_v56 = vld [vmem:[%s4574_s4 + $0x1ac] sm:$0xf0]  ;;  %v3091_v50 = vor.u32 %v3487_v48, %v3090_v47 }
  0xe1   :  { %2724 = vmatmul.msk.bf16.vlgmr.msrb.gmra.mxu2 %vm882_vm0, %v4078_v39  ;;  %2725 = vmatmul.msk.bf16.vlgmr.msrb.gmra.mxu3 %vm882_vm0, %v4078_v39  ;;  %v2815_v62 = vor.u32 %v3420_v56, %v2814_v55  ;;  %v2970_v48 = vld [vmem:[#allocation2 + $0x30] sm:$0xf] }
  0xe2   :  { %2659 = vmatmul.msk.bf16.vlgmr.msrb.gmra.mxu1 %vm882_vm0, %v4116_v61  ;;  %1452 = vmatpush.bf16.msra.mxu0 %v2823_v1  ;;  %v3434_v61 = vld [vmem:[%s4574_s4 + $0x224] sm:$0xf] }
  0xe3   :  { %1420 = vmatpush.bf16.msrb.mxu2 %v2911_v60  ;;  %1433 = vmatpush.bf16.msrb.mxu3 %v2915_v0  ;;  %v2883_v25 = vor.u32 %v3434_v61, %v2880_v44  ;;  %v1476_v60 = vld [vmem:[%s4571_s1] sm:$0xf]  ;;  %v2859_v61 = vor.u32 %v3427_v17, %v2856_v18  ;;  %v3423_v44 = vld [vmem:[%s4574_s4 + $0x1cc] sm:$0xf]  ;;  %v3492_v17 = vld [vmem:[#allocation2 + $0x154] sm:$0xf] }
  0xe4   :  { %1215 = vmatpush.bf16.msrb.mxu1 %v2791_v4  ;;  %v2798_v0 = vld [vmem:[%s4574_s4 + $0x180] sm:$0xf]  ;;  %v2800_v4 = vld [vmem:[%s4574_s4 + $0x190] sm:$0xf0]  ;;  %v3116_v18 = vld [vmem:[#allocation2 + $0x158] sm:$0xf0] }
  0xe5   :  { %v2799_v11 = vor.u32 %v3416_v3, %v2798_v0  ;;  %v3066_v0 = vld [vmem:[#allocation2 + $0xf0] sm:$0xf] }
  0xe6   :  { %1453 = vmatpush.bf16.msra.mxu0 %v2807_v16  ;;  %v2927_v16 = vor.u32 %v3448_v8, %v2926_v7  ;;  %v3463_v7 = vld [vmem:[#allocation2 + $0x64] sm:$0xf0]  ;;  %v3058_v8 = vld [vmem:[#allocation2 + $0xe0] sm:$0xf] }
  0xe7   :  { %1421 = vmatpush.bf16.msrb.mxu2 %v2895_v12  ;;  %1434 = vmatpush.bf16.msrb.mxu3 %v2899_v15  ;;  %v2803_v12 = vor.u32 %v3414_v43, %v2800_v4  ;;  %v2875_v15 = vor.u32 %v3431_v5, %v2872_v6  ;;  %v3494_v43 = vld [vmem:[#allocation2 + $0x164] sm:$0xf]  ;;  %v3124_v4 = vld [vmem:[#allocation2 + $0x168] sm:$0xf0]  ;;  %v2994_v6 = vld [vmem:[#allocation2 + $0x60] sm:$0xf] }
  0xe8   :  { %1216 = vmatpush.bf16.msrb.mxu1 %v2775_v19  ;;  %v2931_v19 = vor.u32 %v3446_v9, %v2928_v10  ;;  %v3127_v5 = vor.u32 %v3494_v43, %v3124_v4  ;;  %v3471_v43 = vld [vmem:[#allocation2 + $0xa4] sm:$0xf0] }
  0xe9   :  { %1454 = vmatmul.bf16.vlgmr.msra.gmra.mxu0 %v4281_v23 }
  0xea   :  { %1538 = vmatpush.bf16.msrb.mxu0 %v2935_v20  ;;  %v2840_v20 = vld [vmem:[%s4574_s4 + $0x1d8] sm:$0xf0] }
  0xeb   :  { %1422 = vmatpush.bf16.msrb.mxu2 %v2879_v24  ;;  %1435 = vmatpush.bf16.msrb.mxu3 %v2883_v25  ;;  %v2843_v21 = vor.u32 %v3423_v44, %v2840_v20  ;;  %v2824_v24 = vld [vmem:[%s4574_s4 + $0x1b8] sm:$0xf0]  ;;  %v2986_v44 = vld [vmem:[#allocation2 + $0x50] sm:$0xf]  ;;  %v3461_v20 = vld [vmem:[#allocation2 + $0x54] sm:$0xf0] }
  0xec   :  { %1217 = vmatpush.bf16.msrb.mxu1 %v2759_v28  ;;  %v2827_v25 = vor.u32 %v3419_v22, %v2824_v24  ;;  %v2936_v28 = vld [vmem:[%s4574_s4 + $0x298] sm:$0xf0]  ;;  %v3050_v22 = vld [vmem:[#allocation2 + $0xd0] sm:$0xf]  ;;  %v3477_v24 = vld [vmem:[#allocation2 + $0xd4] sm:$0xf0] }
  0xed   :  { %v2939_v30 = vor.u32 %v3447_v27, %v2936_v28  ;;  %v3490_v28 = vld [vmem:[#allocation2 + $0x144] sm:$0xf] }
  0xef   :  { %1423 = vmatpush.bf16.msrb.mxu2 %v2863_v34  ;;  %1436 = vmatpush.bf16.msrb.mxu3 %v2867_v13  ;;  %v3131_v34 = vor.u32 %v3497_v33, %v3130_v31  ;;  %v3122_v13 = vld [vmem:[#allocation2 + $0x160] sm:$0xf]  ;;  %v3459_v33 = vld [vmem:[#allocation2 + $0x44] sm:$0xf0] }
  0xf0   :  { %1218 = vmatpush.bf16.msrb.mxu1 %v2743_v37  ;;  %v3123_v35 = vor.u32 %v3495_v14, %v3122_v13  ;;  %v3493_v37 = vld [vmem:[#allocation2 + $0x154] sm:$0xf0]  ;;  %v2978_v31 = vld [vmem:[#allocation2 + $0x40] sm:$0xf] }
  0xf1   :  { %2792 = vmatmul.msk.bf16.vlgmr.msra.gmra.mxu2 %vm882_vm0, %v4172_v32  ;;  %2793 = vmatmul.msk.bf16.vlgmr.msra.gmra.mxu3 %vm882_vm0, %v4172_v32  ;;  %v3115_v38 = vor.u32 %v3493_v37, %v3114_v36  ;;  %v3475_v36 = vld [vmem:[#allocation2 + $0xc4] sm:$0xf0] }
  0xf2   :  { %2727 = vmatmul.msk.bf16.vlgmr.msra.gmra.mxu1 %vm882_vm0, %v4078_v39  ;;  %v2816_v39 = vld [vmem:[%s4574_s4 + $0x1b0] sm:$0xf0]  ;;  %1989 = vmatpush.bf16.msra.mxu0 %v3131_v34  ;;  %v3042_v34 = vld [vmem:[#allocation2 + $0xc0] sm:$0xf] }
  0xf3   :  { %1424 = vmatpush.bf16.msrb.mxu2 %v2847_v42  ;;  %1437 = vmatpush.bf16.msrb.mxu3 %v2851_v45  ;;  %v2819_v1 = vor.u32 %v3418_v57, %v2816_v39  ;;  %v3107_v42 = vor.u32 %v3491_v41, %v3106_v40  ;;  %v3489_v45 = vld [vmem:[#allocation2 + $0x134] sm:$0xf0]  ;;  %v3496_v57 = vld [vmem:[#allocation2 + $0x174] sm:$0xf]  ;;  %v3132_v39 = vld [vmem:[#allocation2 + $0x178] sm:$0xf0]  ;;  %v3043_v37 = vor.u32 %v3475_v36, %v3042_v34 }
  0xf4   :  { %1459 = vmatpush.bf16.msra.mxu1 %v2923_v46  ;;  %v3135_v59 = vor.u32 %v3496_v57, %v3132_v39  ;;  %v3511_v40 = vld [vmem:[#allocation2 + $0x1e4] sm:$0xf0]  ;;  %v3486_v57 = vld [vmem:[#allocation2 + $0x124] sm:$0xf]  ;;  %v3092_v39 = vld [vmem:[#allocation2 + $0x128] sm:$0xf0] }
  0xf6   :  { %1990 = vmatpush.bf16.msra.mxu0 %v3123_v35  ;;  %v2979_v35 = vor.u32 %v3459_v33, %v2978_v31 }
  0xf7   :  { %1425 = vmatpush.bf16.msrb.mxu2 %v2831_v53  ;;  %1438 = vmatpush.bf16.msrb.mxu3 %v2835_v63  ;;  %v3083_v53 = vor.u32 %v3485_v52, %v3082_v51  ;;  %v3074_v63 = vld [vmem:[#allocation2 + $0x100] sm:$0xf]  ;;  %v3034_v51 = vld [vmem:[#allocation2 + $0xb0] sm:$0xf] }
  0xf8   :  { %1460 = vmatpush.bf16.msra.mxu1 %v2907_v54  ;;  %v3483_v54 = vld [vmem:[#allocation2 + $0x104] sm:$0xf0] }
  0xf9   :  { %2942 = vmatmul.msk.bf16.vlgmr.msrb.gmra.mxu0 %vm1501_vm1, %v1476_v60  ;;  %v3075_v56 = vor.u32 %v3483_v54, %v3074_v63  ;;  %v3178_v63 = vld [vmem:[#allocation2 + $0x1d0] sm:$0xf]  ;;  %v3509_v54 = vld [vmem:[#allocation2 + $0x1d4] sm:$0xf0] }
  0xfa   :  { %1991 = vmatpush.bf16.msra.mxu0 %v3115_v38  ;;  %v3186_v38 = vld [vmem:[#allocation2 + $0x1e0] sm:$0xf] }
  0xfb   :  { %1426 = vmatpush.bf16.msrb.mxu2 %v2815_v62  ;;  %1439 = vmatpush.bf16.msrb.mxu3 %v2819_v1  ;;  %v3465_v62 = vld [vmem:[#allocation2 + $0x74] sm:$0xf0] }
  0xfc   :  { %1461 = vmatpush.bf16.msra.mxu1 %v2891_v2  ;;  %v3481_v2 = vld [vmem:[#allocation2 + $0xf4] sm:$0xf0] }
  0xfd   :  { %v3067_v3 = vor.u32 %v3481_v2, %v3066_v0  ;;  %v3026_v0 = vld [vmem:[#allocation2 + $0xa0] sm:$0xf] }
  0xfe   :  { %1992 = vmatpush.bf16.msra.mxu0 %v3107_v42  ;;  %v3187_v42 = vor.u32 %v3511_v40, %v3186_v38  ;;  %v3027_v4 = vor.u32 %v3471_v43, %v3026_v0  ;;  %v3480_v38 = vld [vmem:[#allocation2 + $0xf4] sm:$0xf]  ;;  %v3068_v40 = vld [vmem:[#allocation2 + $0xf8] sm:$0xf0] }
  0xff   :  { %1427 = vmatpush.bf16.msrb.mxu2 %v2799_v11  ;;  %1440 = vmatpush.bf16.msrb.mxu3 %v2803_v12  ;;  %v2995_v11 = vor.u32 %v3463_v7, %v2994_v6  ;;  %v3479_v12 = vld [vmem:[#allocation2 + $0xe4] sm:$0xf0]  ;;  %v2988_v43 = vld [vmem:[#allocation2 + $0x58] sm:$0xf0] }
 0x100   :  { %1462 = vmatpush.bf16.msra.mxu1 %v2875_v15  ;;  %v3059_v15 = vor.u32 %v3479_v12, %v3058_v8  ;;  %v3507_v6 = vld [vmem:[#allocation2 + $0x1c4] sm:$0xf0]  ;;  %v3484_v8 = vld [vmem:[#allocation2 + $0x114] sm:$0xf] }
 0x102   :  { %1428 = vmatmul.bf16.vlgmr.msrb.gmra.mxu2 %v4281_v23  ;;  %2795 = vmatmul.msk.bf16.vlgmr.msrb.gmra.mxu1 %vm882_vm0, %v4172_v32  ;;  %v2808_v32 = vld [vmem:[%s4574_s4 + $0x198] sm:$0xf0] }
 0x103   :  { %1512 = vmatpush.bf16.msra.mxu2 %v2927_v16  ;;  %1525 = vmatpush.bf16.msra.mxu3 %v2931_v19  ;;  %v2811_v29 = vor.u32 %v3415_v26, %v2808_v32  ;;  %v3194_v26 = vld [vmem:[#allocation2 + $0x1f0] sm:$0xf]  ;;  %v3513_v32 = vld [vmem:[#allocation2 + $0x1f4] sm:$0xf0] }
 0x104   :  { %1441 = vmatmul.bf16.vlgmr.msrb.gmra.mxu3 %v4281_v23  ;;  %1463 = vmatpush.bf16.msra.mxu1 %v2859_v61  ;;  %v3119_v61 = vor.u32 %v3492_v17, %v3116_v18  ;;  %v3195_v27 = vor.u32 %v3513_v32, %v3194_v26  ;;  %v2954_v18 = vld [vmem:[#allocation2 + $0x10] sm:$0xf]  ;;  %v3482_v26 = vld [vmem:[#allocation2 + $0x104] sm:$0xf]  ;;  %v3076_v32 = vld [vmem:[#allocation2 + $0x108] sm:$0xf0] }
 0x107   :  { %1976 = vmatpush.bf16.msrb.mxu3 %v3067_v3 }
 0x108   :  { %1464 = vmatpush.bf16.msra.mxu1 %v2843_v21  ;;  %v2987_v21 = vor.u32 %v3461_v20, %v2986_v44  ;;  %v3469_v20 = vld [vmem:[#allocation2 + $0x94] sm:$0xf0] }
 0x10b   :  { %1977 = vmatpush.bf16.msrb.mxu3 %v3059_v15 }
 0x10c   :  { %1465 = vmatpush.bf16.msra.mxu1 %v2827_v25  ;;  %v3051_v25 = vor.u32 %v3477_v24, %v3050_v22  ;;  %v3505_v22 = vld [vmem:[#allocation2 + $0x1b4] sm:$0xf0] }
 0x10f   :  { %1978 = vmatpush.bf16.msrb.mxu3 %v3051_v25 }
 0x110   :  { %1466 = vmatpush.bf16.msra.mxu1 %v2811_v29  ;;  %v3108_v29 = vld [vmem:[#allocation2 + $0x148] sm:$0xf0] }
 0x112   :  { %2940 = vmatmul.msk.bf16.vlgmr.msra.gmra.mxu2 %vm1501_vm1, %v1476_v60 }
 0x113   :  { %1467 = vmatmul.bf16.vlgmr.msra.gmra.mxu1 %v4281_v23  ;;  %v3098_v23 = vld [vmem:[#allocation2 + $0x130] sm:$0xf]  ;;  %1979 = vmatpush.bf16.msrb.mxu3 %v3043_v37 }
 0x114   :  { %1551 = vmatpush.bf16.msrb.mxu1 %v2939_v30  ;;  %2941 = vmatmul.msk.bf16.vlgmr.msra.gmra.mxu3 %vm1501_vm1, %v1476_v60  ;;  %v3099_v46 = vor.u32 %v3489_v45, %v3098_v23  ;;  %v3111_v30 = vor.u32 %v3490_v28, %v3108_v29  ;;  %v3488_v23 = vld [vmem:[#allocation2 + $0x134] sm:$0xf]  ;;  %v3100_v45 = vld [vmem:[#allocation2 + $0x138] sm:$0xf0]  ;;  %v2946_v28 = vld [vmem:[#allocation2] sm:$0xf] }
 0x115   :  { %v3103_v47 = vor.u32 %v3488_v23, %v3100_v45  ;;  %v3451_v29 = vld [vmem:[#allocation2 + $0x4] sm:$0xf0] }
 0x116   :  { %1993 = vmatpush.bf16.msra.mxu0 %v3099_v46  ;;  %v2947_v34 = vor.u32 %v3451_v29, %v2946_v28  ;;  %v3503_v23 = vld [vmem:[#allocation2 + $0x1a4] sm:$0xf0] }
 0x118   :  { %2002 = vmatpush.bf16.msra.mxu1 %v3195_v27  ;;  %v3079_v27 = vor.u32 %v3482_v26, %v3076_v32  ;;  %v3510_v32 = vld [vmem:[#allocation2 + $0x1e4] sm:$0xf] }
 0x11a   :  { %1994 = vmatpush.bf16.msra.mxu0 %v3091_v50  ;;  %v3457_v50 = vld [vmem:[#allocation2 + $0x34] sm:$0xf0] }
 0x11b   :  { %v2971_v52 = vor.u32 %v3457_v50, %v2970_v48  ;;  %v3462_v50 = vld [vmem:[#allocation2 + $0x64] sm:$0xf] }
 0x11c   :  { %2003 = vmatpush.bf16.msra.mxu1 %v3187_v42  ;;  %v3071_v42 = vor.u32 %v3480_v38, %v3068_v40  ;;  %v3508_v38 = vld [vmem:[#allocation2 + $0x1d4] sm:$0xf]  ;;  %v3180_v40 = vld [vmem:[#allocation2 + $0x1d8] sm:$0xf0] }
 0x11e   :  { %1995 = vmatpush.bf16.msra.mxu0 %v3083_v53  ;;  %v3473_v53 = vld [vmem:[#allocation2 + $0xb4] sm:$0xf0] }
 0x122   :  { %1996 = vmatpush.bf16.msra.mxu0 %v3075_v56  ;;  %v3179_v56 = vor.u32 %v3509_v54, %v3178_v63  ;;  %v3060_v63 = vld [vmem:[#allocation2 + $0xe8] sm:$0xf0]  ;;  %v3146_v54 = vld [vmem:[#allocation2 + $0x190] sm:$0xf] }
 0x123   :  { %2943 = vmatmul.msk.bf16.vlgmr.msrb.gmra.mxu1 %vm1501_vm1, %v1476_v60  ;;  %v3002_v60 = vld [vmem:[#allocation2 + $0x70] sm:$0xf] }
 0x124   :  { %v3003_v1 = vor.u32 %v3465_v62, %v3002_v60  ;;  %v2962_v60 = vld [vmem:[#allocation2 + $0x20] sm:$0xf]  ;;  %v3455_v62 = vld [vmem:[#allocation2 + $0x24] sm:$0xf0]  ;;  %2004 = vmatpush.bf16.msra.mxu1 %v3179_v56 }
 0x125   :  { %v2963_v3 = vor.u32 %v3455_v62, %v2962_v60 }
 0x126   :  { %2041 = vmatpush.bf16.msrb.mxu0 %v3135_v59  ;;  %1963 = vmatpush.bf16.msrb.mxu2 %v3003_v1  ;;  %v3095_v59 = vor.u32 %v3486_v57, %v3092_v39 }
 0x12a   :  { %2042 = vmatpush.bf16.msrb.mxu0 %v3127_v5  ;;  %1964 = vmatpush.bf16.msrb.mxu2 %v2995_v11  ;;  %v3170_v5 = vld [vmem:[#allocation2 + $0x1c0] sm:$0xf]  ;;  %v3084_v11 = vld [vmem:[#allocation2 + $0x118] sm:$0xf0] }
 0x12b   :  { %v3171_v7 = vor.u32 %v3507_v6, %v3170_v5  ;;  %v3087_v17 = vor.u32 %v3484_v8, %v3084_v11  ;;  %v3499_v11 = vld [vmem:[#allocation2 + $0x184] sm:$0xf0] }
 0x12d   :  { %2005 = vmatpush.bf16.msra.mxu1 %v3171_v7 }
 0x12e   :  { %2043 = vmatpush.bf16.msrb.mxu0 %v3119_v61  ;;  %1965 = vmatpush.bf16.msrb.mxu2 %v2987_v21  ;;  %v3018_v61 = vld [vmem:[#allocation2 + $0x90] sm:$0xf] }
 0x12f   :  { %v3162_v21 = vld [vmem:[#allocation2 + $0x1b0] sm:$0xf]  ;;  %v3019_v24 = vor.u32 %v3469_v20, %v3018_v61  ;;  %v3458_v20 = vld [vmem:[#allocation2 + $0x44] sm:$0xf] }
 0x130   :  { %v3163_v25 = vor.u32 %v3505_v22, %v3162_v21  ;;  %v2980_v21 = vld [vmem:[#allocation2 + $0x48] sm:$0xf0]  ;;  %v3474_v22 = vld [vmem:[#allocation2 + $0xc4] sm:$0xf] }
 0x132   :  { %2044 = vmatpush.bf16.msrb.mxu0 %v3111_v30  ;;  %1966 = vmatpush.bf16.msrb.mxu2 %v2979_v35  ;;  %v3010_v30 = vld [vmem:[#allocation2 + $0x80] sm:$0xf]  ;;  %v3004_v35 = vld [vmem:[#allocation2 + $0x78] sm:$0xf0] }
 0x133   :  { %2006 = vmatpush.bf16.msra.mxu1 %v3163_v25  ;;  %v3044_v25 = vld [vmem:[#allocation2 + $0xc8] sm:$0xf0] }
 0x136   :  { %2045 = vmatpush.bf16.msrb.mxu0 %v3103_v47  ;;  %1967 = vmatpush.bf16.msrb.mxu2 %v2971_v52  ;;  %v3478_v52 = vld [vmem:[#allocation2 + $0xe4] sm:$0xf] }
 0x137   :  { %v3063_v57 = vor.u32 %v3478_v52, %v3060_v63  ;;  %v3028_v52 = vld [vmem:[#allocation2 + $0xa8] sm:$0xf0]  ;;  %v3506_v63 = vld [vmem:[#allocation2 + $0x1c4] sm:$0xf] }
 0x13a   :  { %2046 = vmatpush.bf16.msrb.mxu0 %v3095_v59  ;;  %1968 = vmatpush.bf16.msrb.mxu2 %v2963_v3  ;;  %v48_v59 = vld [vmem:[%s4577_s7 + $0x10] sm:$0xff] }
 0x13b   :  { %v3460_v3 = vld [vmem:[#allocation2 + $0x54] sm:$0xf]  ;;  %v1563_v7 = vperm.slane %v48_v59, 2 }
 0x13c   :  { %v2991_v5 = vor.u32 %v3460_v3, %v2988_v43  ;;  %v3468_v59 = vld [vmem:[#allocation2 + $0x94] sm:$0xf]  ;;  %v3020_v43 = vld [vmem:[#allocation2 + $0x98] sm:$0xf0] }
 0x13e   :  { %2047 = vmatpush.bf16.msrb.mxu0 %v3087_v17 }
 0x142   :  { %2048 = vmatpush.bf16.msrb.mxu0 %v3079_v27  ;;  %v3188_v27 = vld [vmem:[#allocation2 + $0x1e8] sm:$0xf0] }
 0x143   :  { %v3191_v28 = vor.u32 %v3510_v32, %v3188_v27  ;;  %v3140_v32 = vld [vmem:[#allocation2 + $0x188] sm:$0xf0] }
 0x146   :  { %v4434_v49 = vpop.f32.mrf.mxu0 }
 0x14e   :  { %v1058_v55 = vpop.f32.mrf.mxu0 }
 0x14f   :  { %v4436_v58 = vpop.f32.mrf.mxu1  ;;  %v3035_v55 = vor.u32 %v3473_v53, %v3034_v51  ;;  %v2996_v51 = vld [vmem:[#allocation2 + $0x68] sm:$0xf0] }
 0x150   :  { %v2999_v53 = vor.u32 %v3462_v50, %v2996_v51  ;;  %v1057_v56 = vadd.f32 %v4434_v49, %v4436_v58  ;;  %v3052_v49 = vld [vmem:[#allocation2 + $0xd8] sm:$0xf0]  ;;  %v3138_v58 = vld [vmem:[#allocation2 + $0x180] sm:$0xf]  ;;  %v3470_v51 = vld [vmem:[#allocation2 + $0xa4] sm:$0xf] }
 0x151   :  { %1980 = vmatpush.bf16.msrb.mxu3 %v3035_v55  ;;  %v3501_v55 = vld [vmem:[#allocation2 + $0x194] sm:$0xf0] }
 0x152   :  { %v3147_v39 = vor.u32 %v3501_v55, %v3146_v54  ;;  %v3172_v54 = vld [vmem:[#allocation2 + $0x1c8] sm:$0xf0] }
 0x153   :  { %v3175_v55 = vor.u32 %v3506_v63, %v3172_v54 }
 0x154   :  { %v4438_v9 = vpop.f32.mrf.mxu2  ;;  %v4440_v10 = vpop.f32.mrf.mxu3 }
 0x155   :  { %1981 = vmatpush.bf16.msrb.mxu3 %v3027_v4  ;;  %v3476_v4 = vld [vmem:[#allocation2 + $0xd4] sm:$0xf] }
 0x156   :  { %v4442_v16 = vpop.f32.mrf.mxu0  ;;  %v3055_v8 = vor.u32 %v3476_v4, %v3052_v49  ;;  %v3023_v4 = vor.u32 %v3468_v59, %v3020_v43  ;;  %v3164_v49 = vld [vmem:[#allocation2 + $0x1b8] sm:$0xf0] }
 0x157   :  { %v923_v19 = vpop.f32.mrf.mxu1  ;;  %v1226_v60 = vadd.f32 %v4442_v16, %v1057_v56  ;;  %v3529_v59 = vld [vmem:[%s4576_s6 + $0xf8] sm:$0xff] }
 0x158   :  { %v3453_v19 = vld [vmem:[#allocation2 + $0x14] sm:$0xf0] }
 0x159   :  { %v2955_v44 = vor.u32 %v3453_v19, %v2954_v18  ;;  %1982 = vmatpush.bf16.msrb.mxu3 %v3019_v24  ;;  %v3139_v18 = vor.u32 %v3499_v11, %v3138_v58  ;;  %v3196_v19 = vld [vmem:[#allocation2 + $0x1f8] sm:$0xf0]  ;;  %v2983_v24 = vor.u32 %v3458_v20, %v2980_v21  ;;  %v3466_v11 = vld [vmem:[#allocation2 + $0x84] sm:$0xf]  ;;  %v3500_v21 = vld [vmem:[#allocation2 + $0x194] sm:$0xf] }
 0x15b   :  { %1969 = vmatpush.bf16.msrb.mxu2 %v2955_v44 }
 0x15c   :  { %v897_v13 = vpop.f32.mrf.mxu2  ;;  %v910_v14 = vpop.f32.mrf.mxu3 }
 0x15d   :  { %v3467_v13 = vld [vmem:[#allocation2 + $0x84] sm:$0xf0]  ;;  %v3464_v14 = vld [vmem:[#allocation2 + $0x74] sm:$0xf] }
 0x15e   :  { %v1209_v41 = vpop.f32.mrf.mxu0  ;;  %v3011_v36 = vor.u32 %v3467_v13, %v3010_v30  ;;  %v3007_v37 = vor.u32 %v3464_v14, %v3004_v35  ;;  %v3472_v14 = vld [vmem:[#allocation2 + $0xb4] sm:$0xf]  ;;  %v3036_v35 = vld [vmem:[#allocation2 + $0xb8] sm:$0xf0] }
 0x15f   :  { %v4444_v46 = vpop.f32.mrf.mxu1  ;;  %v3154_v41 = vld [vmem:[#allocation2 + $0x1a0] sm:$0xf]  ;;  %1970 = vmatpush.bf16.msrb.mxu2 %v2947_v34  ;;  %v2972_v34 = vld [vmem:[#allocation2 + $0x38] sm:$0xf0] }
 0x160   :  { %1983 = vmatpush.bf16.msrb.mxu3 %v3011_v36  ;;  %v3155_v48 = vor.u32 %v3503_v23, %v3154_v41  ;;  %v3183_v23 = vor.u32 %v3508_v38, %v3180_v40 }
 0x162   :  { %2007 = vmatpush.bf16.msra.mxu1 %v3155_v48  ;;  %v2964_v48 = vld [vmem:[#allocation2 + $0x28] sm:$0xf0] }
 0x163   :  { %2015 = vmatpush.bf16.msra.mxu2 %v3007_v37  ;;  %v3039_v37 = vor.u32 %v3472_v14, %v3036_v35 }
 0x164   :  { %v4446_v1 = vpop.f32.mrf.mxu2  ;;  %v4448_v2 = vpop.f32.mrf.mxu3  ;;  %2028 = vmatpush.bf16.msra.mxu3 %v3071_v42 }
 0x165   :  { %v1044_v27 = vadd.f32 %v4448_v2, %v4440_v10 }
 0x166   :  { %v4450_v15 = vpop.f32.mrf.mxu0  ;;  %2008 = vmatpush.bf16.msra.mxu1 %v3147_v39  ;;  %v2956_v39 = vld [vmem:[#allocation2 + $0x18] sm:$0xf0] }
 0x167   :  { %v936_v12 = vpop.f32.mrf.mxu1  ;;  %2016 = vmatpush.bf16.msra.mxu2 %v2999_v53  ;;  %v1474_v6 = vadd.f32 %v4450_v15, %v1226_v60  ;;  %v3047_v15 = vor.u32 %v3474_v22, %v3044_v25  ;;  %v3031_v53 = vor.u32 %v3470_v51, %v3028_v52  ;;  %v3148_v22 = vld [vmem:[#allocation2 + $0x198] sm:$0xf0] }
 0x168   :  { %2029 = vmatpush.bf16.msra.mxu3 %v3063_v57  ;;  %v3512_v12 = vld [vmem:[#allocation2 + $0x1f4] sm:$0xf] }
 0x169   :  { %v3199_v44 = vor.u32 %v3512_v12, %v3196_v19  ;;  %v3452_v57 = vld [vmem:[#allocation2 + $0x14] sm:$0xf] }
 0x16a   :  { %2009 = vmatpush.bf16.msra.mxu1 %v3139_v18  ;;  %v2959_v3 = vor.u32 %v3452_v57, %v2956_v39  ;;  %v3156_v18 = vld [vmem:[#allocation2 + $0x1a8] sm:$0xf0]  ;;  %v3520_v57 = vld [vmem:[%s4576_s6 + $0xb0] sm:$0xff] }
 0x16b   :  { %2017 = vmatpush.bf16.msra.mxu2 %v2991_v5  ;;  %v3504_v5 = vld [vmem:[#allocation2 + $0x1b4] sm:$0xf]  ;;  %v3519_v39 = vld [vmem:[%s4576_s6 + $0xa8] sm:$0xff] }
 0x16c   :  { %v1032_v31 = vpop.f32.mrf.mxu2  ;;  %v1045_v33 = vpop.f32.mrf.mxu3  ;;  %2030 = vmatpush.bf16.msra.mxu3 %v3055_v8  ;;  %v2948_v8 = vld [vmem:[#allocation2 + $0x8] sm:$0xf0] }
 0x16d   :  { %v3456_v33 = vld [vmem:[#allocation2 + $0x34] sm:$0xf] }
 0x16e   :  { %v1457_v47 = vpop.f32.mrf.mxu0  ;;  %2054 = vmatpush.bf16.msrb.mxu1 %v3199_v44  ;;  %v2975_v13 = vor.u32 %v3456_v33, %v2972_v34 }
 0x16f   :  { %v4452_v45 = vpop.f32.mrf.mxu1  ;;  %2018 = vmatpush.bf16.msra.mxu2 %v2983_v24  ;;  %v3454_v47 = vld [vmem:[#allocation2 + $0x24] sm:$0xf]  ;;  %v1031_v24 = vadd.f32 %v4446_v1, %v4438_v9 }
 0x170   :  { %2031 = vmatpush.bf16.msra.mxu3 %v3047_v15  ;;  %v2967_v50 = vor.u32 %v3454_v47, %v2964_v48  ;;  %v3498_v15 = vld [vmem:[#allocation2 + $0x184] sm:$0xf]  ;;  %v1070_v38 = vadd.f32 %v4452_v45, %v4444_v46 }
 0x171   :  { %v4481_v1 = vld [vmem:[%s4577_s7] sm:$0xff] }
 0x172   :  { %2055 = vmatpush.bf16.msrb.mxu1 %v3191_v28  ;;  %v1561_v10 = vperm.slane %v4481_v1, 2 }
 0x173   :  { %2019 = vmatpush.bf16.msra.mxu2 %v2975_v13 }
 0x174   :  { %v4460_v62 = vpop.f32.mrf.mxu2  ;;  %v4462_v0 = vpop.f32.mrf.mxu3  ;;  %2032 = vmatpush.bf16.msra.mxu3 %v3039_v37 }
 0x175   :  { %v1224_v28 = vadd.f32 %v4460_v62, %v1031_v24 }
 0x176   :  { %v1540_v16 = vpop.f32.mrf.mxu0  ;;  %2056 = vmatpush.bf16.msrb.mxu1 %v3183_v23  ;;  %v49_v23 = vld [vmem:[%s4577_s7 + $0x18] sm:$0xff] }
 0x177   :  { %v1071_v17 = vpop.f32.mrf.mxu1  ;;  %v1559_v61 = vadd.f32 %v1540_v16, %v1474_v6  ;;  %2020 = vmatpush.bf16.msra.mxu2 %v2967_v50  ;;  %v3167_v6 = vor.u32 %v3504_v5, %v3164_v49  ;;  %v3502_v16 = vld [vmem:[#allocation2 + $0x1a4] sm:$0xf]  ;;  %v3528_v5 = vld [vmem:[%s4576_s6 + $0xf0] sm:$0xff] }
 0x178   :  { %2033 = vmatpush.bf16.msra.mxu3 %v3031_v53  ;;  %v3012_v17 = vld [vmem:[#allocation2 + $0x88] sm:$0xf0]  ;;  %v1564_v53 = vperm.slane %v49_v23, 2  ;;  %v3533_v23 = vld [vmem:[%s4576_s6 + $0x118] sm:$0xff] }
 0x179   :  { %v1567_v26 = vadd.f32 %v1563_v7, %v1559_v61  ;;  %v3450_v7 = vld [vmem:[#allocation2 + $0x4] sm:$0xf]  ;;  %v3015_v19 = vor.u32 %v3466_v11, %v3012_v17  ;;  %v3159_v61 = vor.u32 %v3502_v16, %v3156_v18  ;;  %v3524_v17 = vld [vmem:[%s4576_s6 + $0xd0] sm:$0xff]  ;;  %v3523_v18 = vld [vmem:[%s4576_s6 + $0xc8] sm:$0xff] }
 0x17a   :  { %2057 = vmatpush.bf16.msrb.mxu1 %v3175_v55  ;;  %v2951_v12 = vor.u32 %v3450_v7, %v2948_v8  ;;  %v3514_v7 = vld [vmem:[%s4576_s6 + $0x80] sm:$0xff] }
 0x17b   :  { %v1571_v29 = vmax.f32 %v1567_v26, 0.0  ;;  %2021 = vmatpush.bf16.msra.mxu2 %v2959_v3  ;;  %v3151_v26 = vor.u32 %v3500_v21, %v3148_v22  ;;  %v3517_v3 = vld [vmem:[%s4576_s6 + $0x98] sm:$0xff]  ;;  %v3526_v8 = vld [vmem:[%s4576_s6 + $0xe0] sm:$0xff] }
 0x17c   :  { %v1183_v30 = vpop.f32.mrf.mxu2  ;;  %v1196_v31 = vpop.f32.mrf.mxu3  ;;  %2034 = vmatpush.bf16.msra.mxu3 %v3023_v4  ;;  %v3516_v4 = vld [vmem:[%s4576_s6 + $0x90] sm:$0xff] }
 0x17d   :  { %v1575_v36 = vpack.c.bf16 %v1571_v29, %v1571_v29  ;;  %v4475_v29 = vld [vmem:[%s4577_s7 + $0x8] sm:$0xff]  ;;  %v1225_v30 = vadd.f32 %v4462_v0, %v1044_v27  ;;  %v3143_v31 = vor.u32 %v3498_v15, %v3140_v32 }
 0x17e   :  { %v1542_v42 = vpop.f32.mrf.mxu0  ;;  %2058 = vmatpush.bf16.msrb.mxu1 %v3167_v6  ;;  %v1562_v62 = vperm.slane %v4475_v29, 2  ;;  %v3527_v6 = vld [vmem:[%s4576_s6 + $0xe8] sm:$0xff] }
 0x17f   :  { %v4465_v41 = vpop.f32.mrf.mxu1  ;;  %1997 = vmatmul.bf16.vlgmr.msra.gmra.mxu0 %v1575_v36  ;;  %2022 = vmatpush.bf16.msra.mxu2 %v2951_v12  ;;  %v3525_v12 = vld [vmem:[%s4576_s6 + $0xd8] sm:$0xff] }
 0x180   :  { %2035 = vmatpush.bf16.msra.mxu3 %v3015_v19  ;;  %v1227_v47 = vadd.f32 %v4465_v41, %v1070_v38  ;;  %v3521_v41 = vld [vmem:[%s4576_s6 + $0xb8] sm:$0xff]  ;;  %v3522_v19 = vld [vmem:[%s4576_s6 + $0xc0] sm:$0xff] }
 0x182   :  { %2059 = vmatpush.bf16.msrb.mxu1 %v3159_v61  ;;  %v1641_v61 = vperm.slane %v4481_v1, 3 }
 0x185   :  { %v1429_v56 = vpop.f32.mrf.mxu2 }
 0x186   :  { %2060 = vmatpush.bf16.msrb.mxu1 %v3151_v26  ;;  %v1472_v9 = vadd.f32 %v1429_v56, %v1224_v28 }
 0x187   :  { %v1442_v60 = vpop.f32.mrf.mxu3  ;;  %v1222_v58 = vpop.f32.mrf.mxu1 }
 0x188   :  { %v1473_v2 = vadd.f32 %v1442_v60, %v1225_v30  ;;  %v3518_v60 = vld [vmem:[%s4576_s6 + $0xa0] sm:$0xff]  ;;  %v3515_v58 = vld [vmem:[%s4576_s6 + $0x88] sm:$0xff] }
 0x18a   :  { %2061 = vmatpush.bf16.msrb.mxu1 %v3143_v31 }
 0x18d   :  { %v1431_v44 = vpop.f32.mrf.mxu2 }
 0x18e   :  { %v3537_v44 = vld [vmem:[%s4576_s6 + $0x138] sm:$0xff] }
 0x18f   :  { %v1444_v20 = vpop.f32.mrf.mxu3  ;;  %2049 = vmatmul.bf16.vlgmr.msrb.gmra.mxu0 %v1575_v36 }
 0x190   :  { %v1468_v25 = vpop.f32.mrf.mxu1  ;;  %2293 = vmatpush.bf16.msra.mxu0 %v3537_v44  ;;  %v3536_v20 = vld [vmem:[%s4576_s6 + $0x130] sm:$0xff] }
 0x191   :  { %v1475_v52 = vadd.f32 %v1468_v25, %v1227_v47  ;;  %v3532_v47 = vld [vmem:[%s4576_s6 + $0x110] sm:$0xff] }
 0x194   :  { %2294 = vmatpush.bf16.msra.mxu0 %v3536_v20 }
 0x195   :  { %v1514_v33 = vpop.f32.mrf.mxu2 }
 0x196   :  { %v1557_v34 = vadd.f32 %v1514_v33, %v1472_v9 }
 0x197   :  { %v1527_v13 = vpop.f32.mrf.mxu3 }
 0x198   :  { %v1558_v14 = vadd.f32 %v1527_v13, %v1473_v2  ;;  %v1565_v35 = vadd.f32 %v1561_v10, %v1557_v34  ;;  %v1470_v0 = vpop.f32.mrf.mxu1  ;;  %v1642_v10 = vperm.slane %v4475_v29, 3  ;;  %v3534_v29 = vld [vmem:[%s4576_s6 + $0x120] sm:$0xff] }
 0x19a   :  { %v1566_v36 = vadd.f32 %v1562_v62, %v1558_v14  ;;  %v1569_v37 = vmax.f32 %v1565_v35, 0.0 }
 0x19c   :  { %v1570_v40 = vmax.f32 %v1566_v36, 0.0  ;;  %v1573_v42 = vpack.c.bf16 %v1569_v37, %v1569_v37 }
 0x19d   :  { %v1516_v50 = vpop.f32.mrf.mxu2 }
 0x19e   :  { %v1574_v48 = vpack.c.bf16 %v1570_v40, %v1570_v40  ;;  %1971 = vmatmul.bf16.vlgmr.msrb.gmra.mxu2 %v1573_v42  ;;  %v3530_v50 = vld [vmem:[%s4576_s6 + $0x100] sm:$0xff] }
 0x19f   :  { %v1529_v51 = vpop.f32.mrf.mxu3  ;;  %2200 = vmatpush.bf16.msrb.mxu2 %v3521_v41  ;;  %v2244_v41 = vperm.slane %v4481_v1, 5 }
 0x1a0   :  { %1984 = vmatmul.bf16.vlgmr.msrb.gmra.mxu3 %v1574_v48  ;;  %v1553_v63 = vpop.f32.mrf.mxu1 }
 0x1a1   :  { %v1560_v54 = vadd.f32 %v1553_v63, %v1475_v52  ;;  %2213 = vmatpush.bf16.msrb.mxu3 %v3529_v59 }
 0x1a3   :  { %v1568_v55 = vadd.f32 %v1564_v53, %v1560_v54  ;;  %2201 = vmatpush.bf16.msrb.mxu2 %v3520_v57  ;;  %v2103_v53 = vperm.slane %v4481_v1, 4 }
 0x1a5   :  { %v1572_v56 = vmax.f32 %v1568_v55, 0.0  ;;  %2214 = vmatpush.bf16.msrb.mxu3 %v3528_v5 }
 0x1a7   :  { %v1576_v46 = vpack.c.bf16 %v1572_v56, %v1572_v56  ;;  %2202 = vmatpush.bf16.msrb.mxu2 %v3519_v39 }
 0x1a8   :  { %v1555_v45 = vpop.f32.mrf.mxu1 }
 0x1a9   :  { %2010 = vmatmul.bf16.vlgmr.msra.gmra.mxu1 %v1576_v46  ;;  %2215 = vmatpush.bf16.msrb.mxu3 %v3527_v6 }
 0x1ab   :  { %2203 = vmatpush.bf16.msrb.mxu2 %v3518_v60 }
 0x1ad   :  { %2216 = vmatpush.bf16.msrb.mxu3 %v3526_v8 }
 0x1ae   :  { %2023 = vmatmul.bf16.vlgmr.msra.gmra.mxu2 %v1573_v42  ;;  %v3535_v42 = vld [vmem:[%s4576_s6 + $0x128] sm:$0xff] }
 0x1af   :  { %2204 = vmatpush.bf16.msrb.mxu2 %v3517_v3  ;;  %2295 = vmatpush.bf16.msra.mxu0 %v3535_v42 }
 0x1b0   :  { %2036 = vmatmul.bf16.vlgmr.msra.gmra.mxu3 %v1574_v48  ;;  %v3531_v48 = vld [vmem:[%s4576_s6 + $0x108] sm:$0xff] }
 0x1b1   :  { %2217 = vmatpush.bf16.msrb.mxu3 %v3525_v12 }
 0x1b3   :  { %2205 = vmatpush.bf16.msrb.mxu2 %v3516_v4  ;;  %2296 = vmatpush.bf16.msra.mxu0 %v3534_v29 }
 0x1b5   :  { %2218 = vmatpush.bf16.msrb.mxu3 %v3524_v17 }
 0x1b7   :  { %2206 = vmatpush.bf16.msrb.mxu2 %v3515_v58  ;;  %2297 = vmatpush.bf16.msra.mxu0 %v3533_v23 }
 0x1b9   :  { %2062 = vmatmul.bf16.vlgmr.msrb.gmra.mxu1 %v1576_v46  ;;  %2219 = vmatpush.bf16.msrb.mxu3 %v3523_v18 }
 0x1bb   :  { %2207 = vmatpush.bf16.msrb.mxu2 %v3514_v7  ;;  %2298 = vmatpush.bf16.msra.mxu0 %v3532_v47 }
 0x1bd   :  { %2220 = vmatpush.bf16.msrb.mxu3 %v3522_v19 }
 0x1bf   :  { %2299 = vmatpush.bf16.msra.mxu0 %v3531_v48 }
 0x1c3   :  { %2300 = vmatpush.bf16.msra.mxu0 %v3530_v50 }
 0x1fc   :  { %v1998_v43 = vpop.f32.mrf.mxu0 }
 0x204   :  { %v2000_v49 = vpop.f32.mrf.mxu0 }
 0x20c   :  { %v2050_v11 = vpop.f32.mrf.mxu0 }
 0x214   :  { %v2052_v16 = vpop.f32.mrf.mxu0 }
 0x221   :  { %v1972_v21 = vpop.f32.mrf.mxu2 }
 0x222   :  { %v1973_v22 = vadd.f32 %v1972_v21, %v1641_v61 }
 0x223   :  { %v1985_v24 = vpop.f32.mrf.mxu3 }
 0x224   :  { %v1986_v25 = vadd.f32 %v1985_v24, %v1973_v22 }
 0x226   :  { %v1999_v26 = vadd.f32 %v1998_v43, %v1986_v25  ;;  %v2011_v15 = vpop.f32.mrf.mxu1 }
 0x228   :  { %v2012_v32 = vadd.f32 %v2011_v15, %v1999_v26 }
 0x229   :  { %v1974_v27 = vpop.f32.mrf.mxu2 }
 0x22a   :  { %v2067_v28 = vmax.f32 %v2012_v32, 0.0 }
 0x22b   :  { %v1987_v30 = vpop.f32.mrf.mxu3 }
 0x22c   :  { %v2069_v31 = vpack.c.bf16 %v2067_v28, %v2067_v28 }
 0x22e   :  { %v2013_v9 = vpop.f32.mrf.mxu1  ;;  %2208 = vmatmul.bf16.vlgmr.msrb.gmra.mxu2 %v2069_v31 }
 0x231   :  { %v2024_v2 = vpop.f32.mrf.mxu2 }
 0x232   :  { %v2025_v33 = vadd.f32 %v2024_v2, %v1642_v10 }
 0x233   :  { %v2037_v62 = vpop.f32.mrf.mxu3 }
 0x234   :  { %v2038_v34 = vadd.f32 %v2037_v62, %v2025_v33 }
 0x236   :  { %v2051_v13 = vadd.f32 %v2050_v11, %v2038_v34  ;;  %v2063_v14 = vpop.f32.mrf.mxu1 }
 0x238   :  { %v2064_v35 = vadd.f32 %v2063_v14, %v2051_v13 }
 0x239   :  { %v2026_v0 = vpop.f32.mrf.mxu2 }
 0x23a   :  { %v2068_v36 = vmax.f32 %v2064_v35, 0.0 }
 0x23b   :  { %v2039_v37 = vpop.f32.mrf.mxu3 }
 0x23c   :  { %v2070_v38 = vpack.c.bf16 %v2068_v36, %v2068_v36 }
 0x23e   :  { %v2065_v40 = vpop.f32.mrf.mxu1  ;;  %2221 = vmatmul.bf16.vlgmr.msrb.gmra.mxu3 %v2070_v38 }
 0x2b1   :  { %v2209_v51 = vpop.f32.mrf.mxu2 }
 0x2b2   :  { %v2210_v63 = vadd.f32 %v2209_v51, %v2103_v53 }
 0x2b9   :  { %v2211_v52 = vpop.f32.mrf.mxu2 }
 0x2c1   :  { %v2222_v54 = vpop.f32.mrf.mxu3 }
 0x2c2   :  { %v2223_v55 = vadd.f32 %v2222_v54, %v2210_v63 }
 0x2c4   :  { %v2226_v56 = vmax.f32 %v2223_v55, 0.0 }
 0x2c6   :  { %v2227_v46 = vpack.c.bf16 %v2226_v56, %v2226_v56 }
 0x2c8   :  { %2301 = vmatmul.bf16.vlgmr.msra.gmra.mxu0 %v2227_v46 }
 0x2c9   :  { %v2224_v45 = vpop.f32.mrf.mxu3 }
 0x345   :  { %v2302_v57 = vpop.f32.mrf.mxu0 }
 0x346   :  { %v2303_v39 = vadd.f32 %v2302_v57, %v2244_v41 }
 0x348   :  { %2306 = vst [vmem:[%s4578_s8] sm:$0xff] %v2303_v39 }
 0x34d   :  { %v2304_v59 = vpop.f32.mrf.mxu0 }
 0x34e   :  { %2311 = vsyncpa [#allocation3], 1 }

</bundles_post_ra>
